<compile_context>
chip_gen: v7x
topology: tpu7x:2x2x1
jax: 0.10.0
libtpu: 0.0.40
codegen_flags: <defaults>
</compile_context>

<pallas_src>
import functools
import math

import jax
import jax.numpy as jnp
import numpy as np
from jax import lax
from jax.experimental import pallas as pl
from jax.experimental.pallas import tpu as pltpu


def _layernorm(x, gamma, beta, eps=1e-5):
    # PyTorch nn.LayerNorm: biased variance over the last dim, eps=1e-5.
    mean = jnp.mean(x, axis=-1, keepdims=True)
    var = jnp.mean((x - mean) ** 2, axis=-1, keepdims=True)
    return (x - mean) * lax.rsqrt(var + eps) * gamma + beta


def encoder_kernel(h,
                   x_ref,
                   wq_ref, bq_ref, wk_ref, bk_ref, wv_ref, bv_ref,
                   wo_ref, bo_ref, g1_ref, be1_ref,
                   w1_ref, bf1_ref, w2_ref, bf2_ref, g2_ref, be2_ref,
                   gf_ref, bf_ref,
                   out_ref, act_ref):
    """grid = (batch, layer). Activation carried across layers in act_ref (VMEM)."""
    l = pl.program_id(1)

    # Load the fresh batch element into the resident activation at layer 0.
    @pl.when(l == 0)
    def _():
        act_ref[...] = x_ref[0]

    x = act_ref[...]                              # (S, D) f32 residual stream
    S, D = x.shape
    dk = D // h

    xb = jnp.broadcast_to(x.astype(jnp.bfloat16), (h, S, D))

    # ---- multi-headed attention, all heads batched in one dot_general ----
    proj_dims = (((2,), (1,)), ((0,), (0,)))      # contract D, batch over h
    q = lax.dot_general(xb, wq_ref[0], proj_dims,
                        preferred_element_type=jnp.float32) + bq_ref[0]   # (h,S,dk)
    k = lax.dot_general(xb, wk_ref[0], proj_dims,
                        preferred_element_type=jnp.float32) + bk_ref[0]
    v = lax.dot_general(xb, wv_ref[0], proj_dims,
                        preferred_element_type=jnp.float32) + bv_ref[0]

    scale = 1.0 / math.sqrt(dk)
    scores = lax.dot_general(q.astype(jnp.bfloat16), k.astype(jnp.bfloat16),
                             (((2,), (2,)), ((0,), (0,))),
                             preferred_element_type=jnp.float32) * scale   # (h,S,S)
    scores = scores - jnp.max(scores, axis=-1, keepdims=True)
    p = jnp.exp(scores)
    p = p * pl.reciprocal(jnp.sum(p, axis=-1, keepdims=True), approx=True)

    ctx = lax.dot_general(p.astype(jnp.bfloat16), v.astype(jnp.bfloat16),
                          (((2,), (1,)), ((0,), (0,))),
                          preferred_element_type=jnp.float32)              # (h,S,dk)

    # Output projection: per-head slice of wo, summed over heads (no concat).
    att = lax.dot_general(ctx.astype(jnp.bfloat16), wo_ref[0],
                          (((2,), (1,)), ((0,), (0,))),
                          preferred_element_type=jnp.float32)              # (h,S,D)
    att = jnp.sum(att, axis=0) + bo_ref[0]                                 # (S,D)

    # residual + norm1 (f32)
    a1 = _layernorm(x + att, g1_ref[0], be1_ref[0])

    # ---- feed-forward: Linear -> ReLU -> Linear ----
    ff = jnp.dot(a1.astype(jnp.bfloat16), w1_ref[0],
                 preferred_element_type=jnp.float32) + bf1_ref[0]
    ff = jnp.maximum(ff, 0.0)
    ff = jnp.dot(ff.astype(jnp.bfloat16), w2_ref[0],
                 preferred_element_type=jnp.float32) + bf2_ref[0]

    # residual + norm2 (f32)
    y = _layernorm(a1 + ff, g2_ref[0], be2_ref[0])
    act_ref[...] = y                              # carry to the next layer

    # Fused final LayerNorm at the last layer; single HBM write per batch elem.
    @pl.when(l == pl.num_programs(1) - 1)
    def _():
        out_ref[0] = _layernorm(y, gf_ref[0], bf_ref[0])


# ---------------- host-side parameter packing ----------------

def pack_params(layer_params, h):
    """Stack per-layer params on a leading layer axis; split Q/K/V/O per head;
    cast matmul weights to bf16 (biases / LN params stay f32)."""
    D = layer_params[0]["wq"].shape[0]
    d_ff = layer_params[0]["w1"].shape[1]
    dk = D // h

    def stack(name):
        return jnp.stack([p[name] for p in layer_params], axis=0)

    def head_w(w_all):   # (L, D, D) -> (L, h, D, dk), columns split per head
        L = w_all.shape[0]
        return w_all.reshape(L, D, h, dk).transpose(0, 2, 1, 3).astype(jnp.bfloat16)

    def head_b(b_all):   # (L, D) -> (L, h, 1, dk)
        L = b_all.shape[0]
        return b_all.reshape(L, h, 1, dk)

    L = len(layer_params)
    return {
        "wq": head_w(stack("wq")), "bq": head_b(stack("bq")),
        "wk": head_w(stack("wk")), "bk": head_b(stack("bk")),
        "wv": head_w(stack("wv")), "bv": head_b(stack("bv")),
        "wo": stack("wo").reshape(L, h, dk, D).astype(jnp.bfloat16),   # rows per head
        "bo": stack("bo").reshape(L, 1, D),
        "g1": stack("g1").reshape(L, 1, D), "be1": stack("be1").reshape(L, 1, D),
        "w1": stack("w1").astype(jnp.bfloat16), "bf1": stack("bf1").reshape(L, 1, d_ff),
        "w2": stack("w2").astype(jnp.bfloat16), "bf2": stack("bf2").reshape(L, 1, D),
        "g2": stack("g2").reshape(L, 1, D), "be2": stack("be2").reshape(L, 1, D),
    }


def encoder_forward(x, layer_params, final_gamma, final_beta, h):
    B, S, D = x.shape
    L = len(layer_params)
    packed = pack_params(layer_params, h)

    def layer_spec(shape):
        # per-layer parameter: stream block l of the stacked array
        return pl.BlockSpec((1,) + shape[1:],
                            lambda b, l, _n=len(shape): (l,) + (0,) * (_n - 1))

    def const_spec(shape):
        # grid-invariant parameter (final LayerNorm)
        return pl.BlockSpec(shape, lambda b, l, _n=len(shape): (0,) * _n)

    names = ["wq", "bq", "wk", "bk", "wv", "bv", "wo", "bo",
             "g1", "be1", "w1", "bf1", "w2", "bf2", "g2", "be2"]

    args = [x]
    in_specs = [pl.BlockSpec((1, S, D), lambda b, l: (b, 0, 0))]
    for n in names:
        a = packed[n]
        args.append(a)
        in_specs.append(layer_spec(a.shape))

    gf = final_gamma.reshape(1, D).astype(jnp.float32)
    bf = final_beta.reshape(1, D).astype(jnp.float32)
    args += [gf, bf]
    in_specs += [const_spec((1, D)), const_spec((1, D))]

    return pl.pallas_call(
        functools.partial(encoder_kernel, h),
        out_shape=jax.ShapeDtypeStruct((B, S, D), jnp.float32),
        grid=(B, L),
        in_specs=in_specs,
        out_specs=pl.BlockSpec((1, S, D), lambda b, l: (b, 0, 0)),
        scratch_shapes=[pltpu.VMEM((S, D), jnp.float32)],
        compiler_params=pltpu.CompilerParams(
            dimension_semantics=("parallel", "arbitrary"),
            vmem_limit_bytes=48 * 1024 * 1024),
    )(*args)


# ---------------- parameter init (deterministic, synthetic) ----------------

def init_params(key, n_layer, d_model, d_ff):
    def lin(k, fan_in, fan_out):
        return 0.05 * jax.random.normal(k, (fan_in, fan_out), jnp.float32)

    layer_params = []
    for _ in range(n_layer):
        keys = jax.random.split(key, 8)
        key = keys[0]
        p = {
            "wq": lin(keys[1], d_model, d_model), "bq": jnp.zeros((d_model,), jnp.float32),
            "wk": lin(keys[2], d_model, d_model), "bk": jnp.zeros((d_model,), jnp.float32),
            "wv": lin(keys[3], d_model, d_model), "bv": jnp.zeros((d_model,), jnp.float32),
            "wo": lin(keys[4], d_model, d_model), "bo": jnp.zeros((d_model,), jnp.float32),
            "g1": jnp.ones((d_model,), jnp.float32), "be1": jnp.zeros((d_model,), jnp.float32),
            "w1": lin(keys[5], d_model, d_ff), "bf1": 0.01 * jnp.ones((d_ff,), jnp.float32),
            "w2": lin(keys[6], d_ff, d_model), "bf2": 0.01 * jnp.ones((d_model,), jnp.float32),
            "g2": jnp.ones((d_model,), jnp.float32), "be2": jnp.zeros((d_model,), jnp.float32),
        }
        layer_params.append(p)
    final_gamma = jnp.ones((d_model,), jnp.float32)
    final_beta = jnp.zeros((d_model,), jnp.float32)
    return layer_params, final_gamma, final_beta


# ---------------- pure-JAX f32 reference (sanity check) ----------------

def ref_layer(x, p, h):
    D = x.shape[-1]
    dk = D // h
    q = x @ p["wq"] + p["bq"]
    k = x @ p["wk"] + p["bk"]
    v = x @ p["wv"] + p["bv"]
    B, S, _ = x.shape
    qh = q.reshape(B, S, h, dk).transpose(0, 2, 1, 3)
    kh = k.reshape(B, S, h, dk).transpose(0, 2, 1, 3)
    vh = v.reshape(B, S, h, dk).transpose(0, 2, 1, 3)
    scores = jnp.einsum("bhqd,bhkd->bhqk", qh, kh) / math.sqrt(dk)
    p_att = jax.nn.softmax(scores, axis=-1)
    att = jnp.einsum("bhqk,bhkd->bhqd", p_att, vh).transpose(0, 2, 1, 3).reshape(B, S, D)
    att = att @ p["wo"] + p["bo"]
    att = _layernorm(x + att, p["g1"], p["be1"])
    ff = jnp.maximum(att @ p["w1"] + p["bf1"], 0.0) @ p["w2"] + p["bf2"]
    return _layernorm(att + ff, p["g2"], p["be2"])


def ref_encoder(x, layer_params, g, b, h):
    for p in layer_params:
        x = ref_layer(x, p, h)
    return _layernorm(x, g, b)


if __name__ == "__main__":
    # small shapes: batch=2, seq=8, d_model=32, heads=4, d_ff=64, n_layer=2
    B, S, D, H, DFF, NLAYER = 2, 8, 32, 4, 64, 2
    NUM_EMBEDS = 100  # unused: Encoder.forward never applies self.embedding

    key = jax.random.PRNGKey(0)
    kx, kp = jax.random.split(key)
    x = jax.random.normal(kx, (B, S, D), jnp.float32)
    layer_params, fg, fb = init_params(kp, NLAYER, D, DFF)

    out = encoder_forward(x, layer_params, fg, fb, H)
    out = jax.block_until_ready(out)

    ref = ref_encoder(x, layer_params, fg, fb, H)
    np.testing.assert_allclose(np.asarray(out), np.asarray(ref), atol=5e-2, rtol=5e-2)

    print("KERNEL_OK")
</pallas_src>

<mosaic_0001>
module attributes {stable_mosaic.version = 11 : i64} {
  func.func @encoder_kernel(%arg0: i32, %arg1: i32, %arg2: memref<1x8x32xf32, #tpu.memory_space<vmem>>, %arg3: memref<1x4x32x8xbf16, #tpu.memory_space<vmem>>, %arg4: memref<1x4x1x8xf32, #tpu.memory_space<vmem>>, %arg5: memref<1x4x32x8xbf16, #tpu.memory_space<vmem>>, %arg6: memref<1x4x1x8xf32, #tpu.memory_space<vmem>>, %arg7: memref<1x4x32x8xbf16, #tpu.memory_space<vmem>>, %arg8: memref<1x4x1x8xf32, #tpu.memory_space<vmem>>, %arg9: memref<1x4x8x32xbf16, #tpu.memory_space<vmem>>, %arg10: memref<1x1x32xf32, #tpu.memory_space<vmem>>, %arg11: memref<1x1x32xf32, #tpu.memory_space<vmem>>, %arg12: memref<1x1x32xf32, #tpu.memory_space<vmem>>, %arg13: memref<1x32x64xbf16, #tpu.memory_space<vmem>>, %arg14: memref<1x1x64xf32, #tpu.memory_space<vmem>>, %arg15: memref<1x64x32xbf16, #tpu.memory_space<vmem>>, %arg16: memref<1x1x32xf32, #tpu.memory_space<vmem>>, %arg17: memref<1x1x32xf32, #tpu.memory_space<vmem>>, %arg18: memref<1x1x32xf32, #tpu.memory_space<vmem>>, %arg19: memref<1x32xf32, #tpu.memory_space<vmem>>, %arg20: memref<1x32xf32, #tpu.memory_space<vmem>>, %arg21: memref<1x8x32xf32, #tpu.memory_space<vmem>>, %arg22: memref<8x32xf32, #tpu.memory_space<vmem>>) attributes {dimension_semantics = [#tpu.dimension_semantics<parallel>, #tpu.dimension_semantics<arbitrary>], iteration_bounds = array<i64: 2, 2>, scalar_prefetch = 0 : i64, scratch_operands = 1 : i64, tpu.core_type = #tpu.core_type<tc>, window_params = [{transform_indices = @transform_0, window_bounds = array<i64: 1, 8, 32>}, {transform_indices = @transform_1, window_bounds = array<i64: 1, 4, 32, 8>}, {transform_indices = @transform_2, window_bounds = array<i64: 1, 4, 1, 8>}, {transform_indices = @transform_3, window_bounds = array<i64: 1, 4, 32, 8>}, {transform_indices = @transform_4, window_bounds = array<i64: 1, 4, 1, 8>}, {transform_indices = @transform_5, window_bounds = array<i64: 1, 4, 32, 8>}, {transform_indices = @transform_6, window_bounds = array<i64: 1, 4, 1, 8>}, {transform_indices = @transform_7, window_bounds = array<i64: 1, 4, 8, 32>}, {transform_indices = @transform_8, window_bounds = array<i64: 1, 1, 32>}, {transform_indices = @transform_9, window_bounds = array<i64: 1, 1, 32>}, {transform_indices = @transform_10, window_bounds = array<i64: 1, 1, 32>}, {transform_indices = @transform_11, window_bounds = array<i64: 1, 32, 64>}, {transform_indices = @transform_12, window_bounds = array<i64: 1, 1, 64>}, {transform_indices = @transform_13, window_bounds = array<i64: 1, 64, 32>}, {transform_indices = @transform_14, window_bounds = array<i64: 1, 1, 32>}, {transform_indices = @transform_15, window_bounds = array<i64: 1, 1, 32>}, {transform_indices = @transform_16, window_bounds = array<i64: 1, 1, 32>}, {pipeline_mode = #tpu.pipeline_mode<synchronous>, transform_indices = @transform_17, window_bounds = array<i64: 1, 32>}, {pipeline_mode = #tpu.pipeline_mode<synchronous>, transform_indices = @transform_18, window_bounds = array<i64: 1, 32>}, {transform_indices = @transform_19, window_bounds = array<i64: 1, 8, 32>}]} {
    %c0_i32 = arith.constant 0 : i32
    %0 = arith.cmpi eq, %arg1, %c0_i32 : i32
    %1 = arith.extui %0 : i1 to i32
    %c0_i32_0 = arith.constant 0 : i32
    %2 = arith.cmpi ne, %1, %c0_i32_0 : i32
    scf.if %2 {
      %c0_82 = arith.constant 0 : index
      %c0_83 = arith.constant 0 : index
      %c0_84 = arith.constant 0 : index
      %131 = vector.load %arg2[%c0_82, %c0_83, %c0_84] : memref<1x8x32xf32, #tpu.memory_space<vmem>>, vector<1x8x32xf32>
      %132 = vector.shape_cast %131 : vector<1x8x32xf32> to vector<8x32xf32>
      %c0_85 = arith.constant 0 : index
      %c0_86 = arith.constant 0 : index
      %133 = vector.load %arg22[%c0_85, %c0_86] : memref<8x32xf32, #tpu.memory_space<vmem>>, vector<8x32xf32>
      tpu.vector_store %arg22[%c0_85, %c0_86], %132 {strides = array<i32>} : memref<8x32xf32, #tpu.memory_space<vmem>>, vector<8x32xf32>,
    } else {
    }
    %c0 = arith.constant 0 : index
    %c0_1 = arith.constant 0 : index
    %3 = vector.load %arg22[%c0, %c0_1] : memref<8x32xf32, #tpu.memory_space<vmem>>, vector<8x32xf32>
    %4 = arith.truncf %3 : vector<8x32xf32> to vector<8x32xbf16>
    %5 = vector.shape_cast %4 : vector<8x32xbf16> to vector<1x8x32xbf16>
    %6 = vector.broadcast %5 : vector<1x8x32xbf16> to vector<4x8x32xbf16>
    %c0_2 = arith.constant 0 : index
    %c0_3 = arith.constant 0 : index
    %c0_4 = arith.constant 0 : index
    %c0_5 = arith.constant 0 : index
    %7 = vector.load %arg3[%c0_2, %c0_3, %c0_4, %c0_5] : memref<1x4x32x8xbf16, #tpu.memory_space<vmem>>, vector<1x4x32x8xbf16>
    %8 = vector.shape_cast %7 : vector<1x4x32x8xbf16> to vector<4x32x8xbf16>
    %cst = arith.constant dense<0.000000e+00> : vector<4x8x8xf32>
    %9 = tpu.matmul %6, %8, %cst {dimension_numbers = #tpu.dot_dimension_numbers<[2], [1], [1], [2], [0, 0, 0, 1, 1, 2], [0], [0]>} : vector<4x8x32xbf16>, vector<4x32x8xbf16>, vector<4x8x8xf32> -> vector<4x8x8xf32>
    %c0_6 = arith.constant 0 : index
    %c0_7 = arith.constant 0 : index
    %c0_8 = arith.constant 0 : index
    %c0_9 = arith.constant 0 : index
    %10 = vector.load %arg4[%c0_6, %c0_7, %c0_8, %c0_9] : memref<1x4x1x8xf32, #tpu.memory_space<vmem>>, vector<1x4x1x8xf32>
    %11 = vector.shape_cast %10 : vector<1x4x1x8xf32> to vector<4x1x8xf32>
    %12 = vector.broadcast %11 : vector<4x1x8xf32> to vector<4x8x8xf32>
    %13 = arith.addf %9, %12 : vector<4x8x8xf32>
    %c0_10 = arith.constant 0 : index
    %c0_11 = arith.constant 0 : index
    %c0_12 = arith.constant 0 : index
    %c0_13 = arith.constant 0 : index
    %14 = vector.load %arg5[%c0_10, %c0_11, %c0_12, %c0_13] : memref<1x4x32x8xbf16, #tpu.memory_space<vmem>>, vector<1x4x32x8xbf16>
    %15 = vector.shape_cast %14 : vector<1x4x32x8xbf16> to vector<4x32x8xbf16>
    %cst_14 = arith.constant dense<0.000000e+00> : vector<4x8x8xf32>
    %16 = tpu.matmul %6, %15, %cst_14 {dimension_numbers = #tpu.dot_dimension_numbers<[2], [1], [1], [2], [0, 0, 0, 1, 1, 2], [0], [0]>} : vector<4x8x32xbf16>, vector<4x32x8xbf16>, vector<4x8x8xf32> -> vector<4x8x8xf32>
    %c0_15 = arith.constant 0 : index
    %c0_16 = arith.constant 0 : index
    %c0_17 = arith.constant 0 : index
    %c0_18 = arith.constant 0 : index
    %17 = vector.load %arg6[%c0_15, %c0_16, %c0_17, %c0_18] : memref<1x4x1x8xf32, #tpu.memory_space<vmem>>, vector<1x4x1x8xf32>
    %18 = vector.shape_cast %17 : vector<1x4x1x8xf32> to vector<4x1x8xf32>
    %19 = vector.broadcast %18 : vector<4x1x8xf32> to vector<4x8x8xf32>
    %20 = arith.addf %16, %19 : vector<4x8x8xf32>
    %c0_19 = arith.constant 0 : index
    %c0_20 = arith.constant 0 : index
    %c0_21 = arith.constant 0 : index
    %c0_22 = arith.constant 0 : index
    %21 = vector.load %arg7[%c0_19, %c0_20, %c0_21, %c0_22] : memref<1x4x32x8xbf16, #tpu.memory_space<vmem>>, vector<1x4x32x8xbf16>
    %22 = vector.shape_cast %21 : vector<1x4x32x8xbf16> to vector<4x32x8xbf16>
    %cst_23 = arith.constant dense<0.000000e+00> : vector<4x8x8xf32>
    %23 = tpu.matmul %6, %22, %cst_23 {dimension_numbers = #tpu.dot_dimension_numbers<[2], [1], [1], [2], [0, 0, 0, 1, 1, 2], [0], [0]>} : vector<4x8x32xbf16>, vector<4x32x8xbf16>, vector<4x8x8xf32> -> vector<4x8x8xf32>
    %c0_24 = arith.constant 0 : index
    %c0_25 = arith.constant 0 : index
    %c0_26 = arith.constant 0 : index
    %c0_27 = arith.constant 0 : index
    %24 = vector.load %arg8[%c0_24, %c0_25, %c0_26, %c0_27] : memref<1x4x1x8xf32, #tpu.memory_space<vmem>>, vector<1x4x1x8xf32>
    %25 = vector.shape_cast %24 : vector<1x4x1x8xf32> to vector<4x1x8xf32>
    %26 = vector.broadcast %25 : vector<4x1x8xf32> to vector<4x8x8xf32>
    %27 = arith.addf %23, %26 : vector<4x8x8xf32>
    %28 = arith.truncf %13 : vector<4x8x8xf32> to vector<4x8x8xbf16>
    %29 = arith.truncf %20 : vector<4x8x8xf32> to vector<4x8x8xbf16>
    %cst_28 = arith.constant dense<0.000000e+00> : vector<4x8x8xf32>
    %30 = tpu.matmul %28, %29, %cst_28 {dimension_numbers = #tpu.dot_dimension_numbers<[2], [2], [1], [1], [0, 0, 0, 1, 1, 1], [0], [0]>} : vector<4x8x8xbf16>, vector<4x8x8xbf16>, vector<4x8x8xf32> -> vector<4x8x8xf32>
    %cst_29 = arith.constant 0.353553385 : f32
    %31 = vector.broadcast %cst_29 : f32 to vector<4x8x8xf32>
    %32 = arith.mulf %30, %31 : vector<4x8x8xf32>
    %cst_30 = arith.constant dense<0xFF800000> : vector<4x8xf32>
    %33 = vector.multi_reduction <maximumf>, %32, %cst_30 [2] : vector<4x8x8xf32> to vector<4x8xf32>
    %34 = vector.shape_cast %33 : vector<4x8xf32> to vector<4x8x1xf32>
    %35 = vector.broadcast %34 : vector<4x8x1xf32> to vector<4x8x8xf32>
    %36 = arith.subf %32, %35 : vector<4x8x8xf32>
    %37 = math.exp %36 : vector<4x8x8xf32>
    %cst_31 = arith.constant dense<0.000000e+00> : vector<4x8xf32>
    %38 = vector.multi_reduction <add>, %37, %cst_31 [2] : vector<4x8x8xf32> to vector<4x8xf32>
    %39 = vector.shape_cast %38 : vector<4x8xf32> to vector<4x8x1xf32>
    %40 = tpu.reciprocal %39 {approx = true} : vector<4x8x1xf32> -> vector<4x8x1xf32>
    %41 = vector.broadcast %40 : vector<4x8x1xf32> to vector<4x8x8xf32>
    %42 = arith.mulf %37, %41 : vector<4x8x8xf32>
    %43 = arith.truncf %42 : vector<4x8x8xf32> to vector<4x8x8xbf16>
    %44 = arith.truncf %27 : vector<4x8x8xf32> to vector<4x8x8xbf16>
    %cst_32 = arith.constant dense<0.000000e+00> : vector<4x8x8xf32>
    %45 = tpu.matmul %43, %44, %cst_32 {dimension_numbers = #tpu.dot_dimension_numbers<[2], [1], [1], [2], [0, 0, 0, 1, 1, 2], [0], [0]>} : vector<4x8x8xbf16>, vector<4x8x8xbf16>, vector<4x8x8xf32> -> vector<4x8x8xf32>
    %46 = arith.truncf %45 : vector<4x8x8xf32> to vector<4x8x8xbf16>
    %c0_33 = arith.constant 0 : index
    %c0_34 = arith.constant 0 : index
    %c0_35 = arith.constant 0 : index
    %c0_36 = arith.constant 0 : index
    %47 = vector.load %arg9[%c0_33, %c0_34, %c0_35, %c0_36] : memref<1x4x8x32xbf16, #tpu.memory_space<vmem>>, vector<1x4x8x32xbf16>
    %48 = vector.shape_cast %47 : vector<1x4x8x32xbf16> to vector<4x8x32xbf16>
    %cst_37 = arith.constant dense<0.000000e+00> : vector<4x8x32xf32>
    %49 = tpu.matmul %46, %48, %cst_37 {dimension_numbers = #tpu.dot_dimension_numbers<[2], [1], [1], [2], [0, 0, 0, 1, 1, 2], [0], [0]>} : vector<4x8x8xbf16>, vector<4x8x32xbf16>, vector<4x8x32xf32> -> vector<4x8x32xf32>
    %cst_38 = arith.constant dense<0.000000e+00> : vector<8x32xf32>
    %50 = vector.multi_reduction <add>, %49, %cst_38 [0] : vector<4x8x32xf32> to vector<8x32xf32>
    %c0_39 = arith.constant 0 : index
    %c0_40 = arith.constant 0 : index
    %c0_41 = arith.constant 0 : index
    %51 = vector.load %arg10[%c0_39, %c0_40, %c0_41] : memref<1x1x32xf32, #tpu.memory_space<vmem>>, vector<1x1x32xf32>
    %52 = vector.shape_cast %51 : vector<1x1x32xf32> to vector<1x32xf32>
    %53 = vector.broadcast %52 : vector<1x32xf32> to vector<8x32xf32>
    %54 = arith.addf %50, %53 : vector<8x32xf32>
    %55 = arith.addf %3, %54 : vector<8x32xf32>
    %c0_42 = arith.constant 0 : index
    %c0_43 = arith.constant 0 : index
    %c0_44 = arith.constant 0 : index
    %56 = vector.load %arg11[%c0_42, %c0_43, %c0_44] : memref<1x1x32xf32, #tpu.memory_space<vmem>>, vector<1x1x32xf32>
    %57 = vector.shape_cast %56 : vector<1x1x32xf32> to vector<1x32xf32>
    %c0_45 = arith.constant 0 : index
    %c0_46 = arith.constant 0 : index
    %c0_47 = arith.constant 0 : index
    %58 = vector.load %arg12[%c0_45, %c0_46, %c0_47] : memref<1x1x32xf32, #tpu.memory_space<vmem>>, vector<1x1x32xf32>
    %59 = vector.shape_cast %58 : vector<1x1x32xf32> to vector<1x32xf32>
    %cst_48 = arith.constant dense<0.000000e+00> : vector<8xf32>
    %60 = vector.multi_reduction <add>, %55, %cst_48 [1] : vector<8x32xf32> to vector<8xf32>
    %61 = vector.shape_cast %60 : vector<8xf32> to vector<8x1xf32>
    %cst_49 = arith.constant 3.200000e+01 : f32
    %62 = vector.broadcast %cst_49 : f32 to vector<8x1xf32>
    %63 = arith.divf %61, %62 : vector<8x1xf32>
    %64 = vector.broadcast %63 : vector<8x1xf32> to vector<8x32xf32>
    %65 = arith.subf %55, %64 : vector<8x32xf32>
    %66 = arith.mulf %65, %65 : vector<8x32xf32>
    %cst_50 = arith.constant dense<0.000000e+00> : vector<8xf32>
    %67 = vector.multi_reduction <add>, %66, %cst_50 [1] : vector<8x32xf32> to vector<8xf32>
    %68 = vector.shape_cast %67 : vector<8xf32> to vector<8x1xf32>
    %cst_51 = arith.constant 3.200000e+01 : f32
    %69 = vector.broadcast %cst_51 : f32 to vector<8x1xf32>
    %70 = arith.divf %68, %69 : vector<8x1xf32>
    %71 = vector.broadcast %63 : vector<8x1xf32> to vector<8x32xf32>
    %72 = arith.subf %55, %71 : vector<8x32xf32>
    %cst_52 = arith.constant 9.99999974E-6 : f32
    %73 = vector.broadcast %cst_52 : f32 to vector<8x1xf32>
    %74 = arith.addf %70, %73 : vector<8x1xf32>
    %75 = math.rsqrt %74 : vector<8x1xf32>
    %76 = vector.broadcast %75 : vector<8x1xf32> to vector<8x32xf32>
    %77 = arith.mulf %72, %76 : vector<8x32xf32>
    %78 = vector.broadcast %57 : vector<1x32xf32> to vector<8x32xf32>
    %79 = arith.mulf %77, %78 : vector<8x32xf32>
    %80 = vector.broadcast %59 : vector<1x32xf32> to vector<8x32xf32>
    %81 = arith.addf %79, %80 : vector<8x32xf32>
    %82 = arith.truncf %81 : vector<8x32xf32> to vector<8x32xbf16>
    %c0_53 = arith.constant 0 : index
    %c0_54 = arith.constant 0 : index
    %c0_55 = arith.constant 0 : index
    %83 = vector.load %arg13[%c0_53, %c0_54, %c0_55] : memref<1x32x64xbf16, #tpu.memory_space<vmem>>, vector<1x32x64xbf16>
    %84 = vector.shape_cast %83 : vector<1x32x64xbf16> to vector<32x64xbf16>
    %cst_56 = arith.constant dense<0.000000e+00> : vector<8x64xf32>
    %85 = tpu.matmul %82, %84, %cst_56 {dimension_numbers = #tpu.dot_dimension_numbers<[1], [0], [0], [1], [0, 0, 1, 1], [], []>} : vector<8x32xbf16>, vector<32x64xbf16>, vector<8x64xf32> -> vector<8x64xf32>
    %c0_57 = arith.constant 0 : index
    %c0_58 = arith.constant 0 : index
    %c0_59 = arith.constant 0 : index
    %86 = vector.load %arg14[%c0_57, %c0_58, %c0_59] : memref<1x1x64xf32, #tpu.memory_space<vmem>>, vector<1x1x64xf32>
    %87 = vector.shape_cast %86 : vector<1x1x64xf32> to vector<1x64xf32>
    %88 = vector.broadcast %87 : vector<1x64xf32> to vector<8x64xf32>
    %89 = arith.addf %85, %88 : vector<8x64xf32>
    %cst_60 = arith.constant 0.000000e+00 : f32
    %90 = vector.broadcast %cst_60 : f32 to vector<8x64xf32>
    %91 = arith.maximumf %89, %90 : vector<8x64xf32>
    %92 = arith.truncf %91 : vector<8x64xf32> to vector<8x64xbf16>
    %c0_61 = arith.constant 0 : index
    %c0_62 = arith.constant 0 : index
    %c0_63 = arith.constant 0 : index
    %93 = vector.load %arg15[%c0_61, %c0_62, %c0_63] : memref<1x64x32xbf16, #tpu.memory_space<vmem>>, vector<1x64x32xbf16>
    %94 = vector.shape_cast %93 : vector<1x64x32xbf16> to vector<64x32xbf16>
    %cst_64 = arith.constant dense<0.000000e+00> : vector<8x32xf32>
    %95 = tpu.matmul %92, %94, %cst_64 {dimension_numbers = #tpu.dot_dimension_numbers<[1], [0], [0], [1], [0, 0, 1, 1], [], []>} : vector<8x64xbf16>, vector<64x32xbf16>, vector<8x32xf32> -> vector<8x32xf32>
    %c0_65 = arith.constant 0 : index
    %c0_66 = arith.constant 0 : index
    %c0_67 = arith.constant 0 : index
    %96 = vector.load %arg16[%c0_65, %c0_66, %c0_67] : memref<1x1x32xf32, #tpu.memory_space<vmem>>, vector<1x1x32xf32>
    %97 = vector.shape_cast %96 : vector<1x1x32xf32> to vector<1x32xf32>
    %98 = vector.broadcast %97 : vector<1x32xf32> to vector<8x32xf32>
    %99 = arith.addf %95, %98 : vector<8x32xf32>
    %100 = arith.addf %81, %99 : vector<8x32xf32>
    %c0_68 = arith.constant 0 : index
    %c0_69 = arith.constant 0 : index
    %c0_70 = arith.constant 0 : index
    %101 = vector.load %arg17[%c0_68, %c0_69, %c0_70] : memref<1x1x32xf32, #tpu.memory_space<vmem>>, vector<1x1x32xf32>
    %102 = vector.shape_cast %101 : vector<1x1x32xf32> to vector<1x32xf32>
    %c0_71 = arith.constant 0 : index
    %c0_72 = arith.constant 0 : index
    %c0_73 = arith.constant 0 : index
    %103 = vector.load %arg18[%c0_71, %c0_72, %c0_73] : memref<1x1x32xf32, #tpu.memory_space<vmem>>, vector<1x1x32xf32>
    %104 = vector.shape_cast %103 : vector<1x1x32xf32> to vector<1x32xf32>
    %cst_74 = arith.constant dense<0.000000e+00> : vector<8xf32>
    %105 = vector.multi_reduction <add>, %100, %cst_74 [1] : vector<8x32xf32> to vector<8xf32>
    %106 = vector.shape_cast %105 : vector<8xf32> to vector<8x1xf32>
    %cst_75 = arith.constant 3.200000e+01 : f32
    %107 = vector.broadcast %cst_75 : f32 to vector<8x1xf32>
    %108 = arith.divf %106, %107 : vector<8x1xf32>
    %109 = vector.broadcast %108 : vector<8x1xf32> to vector<8x32xf32>
    %110 = arith.subf %100, %109 : vector<8x32xf32>
    %111 = arith.mulf %110, %110 : vector<8x32xf32>
    %cst_76 = arith.constant dense<0.000000e+00> : vector<8xf32>
    %112 = vector.multi_reduction <add>, %111, %cst_76 [1] : vector<8x32xf32> to vector<8xf32>
    %113 = vector.shape_cast %112 : vector<8xf32> to vector<8x1xf32>
    %cst_77 = arith.constant 3.200000e+01 : f32
    %114 = vector.broadcast %cst_77 : f32 to vector<8x1xf32>
    %115 = arith.divf %113, %114 : vector<8x1xf32>
    %116 = vector.broadcast %108 : vector<8x1xf32> to vector<8x32xf32>
    %117 = arith.subf %100, %116 : vector<8x32xf32>
    %cst_78 = arith.constant 9.99999974E-6 : f32
    %118 = vector.broadcast %cst_78 : f32 to vector<8x1xf32>
    %119 = arith.addf %115, %118 : vector<8x1xf32>
    %120 = math.rsqrt %119 : vector<8x1xf32>
    %121 = vector.broadcast %120 : vector<8x1xf32> to vector<8x32xf32>
    %122 = arith.mulf %117, %121 : vector<8x32xf32>
    %123 = vector.broadcast %102 : vector<1x32xf32> to vector<8x32xf32>
    %124 = arith.mulf %122, %123 : vector<8x32xf32>
    %125 = vector.broadcast %104 : vector<1x32xf32> to vector<8x32xf32>
    %126 = arith.addf %124, %125 : vector<8x32xf32>
    %c0_79 = arith.constant 0 : index
    %c0_80 = arith.constant 0 : index
    %127 = vector.load %arg22[%c0_79, %c0_80] : memref<8x32xf32, #tpu.memory_space<vmem>>, vector<8x32xf32>
    tpu.vector_store %arg22[%c0_79, %c0_80], %126 {strides = array<i32>} : memref<8x32xf32, #tpu.memory_space<vmem>>, vector<8x32xf32>,
    %c1_i32 = arith.constant 1 : i32
    %128 = arith.cmpi eq, %arg1, %c1_i32 : i32
    %129 = arith.extui %128 : i1 to i32
    %c0_i32_81 = arith.constant 0 : i32
    %130 = arith.cmpi ne, %129, %c0_i32_81 : i32
    scf.if %130 {
      %c0_82 = arith.constant 0 : index
      %c0_83 = arith.constant 0 : index
      %131 = vector.load %arg19[%c0_82, %c0_83] : memref<1x32xf32, #tpu.memory_space<vmem>>, vector<1x32xf32>
      %132 = vector.shape_cast %131 : vector<1x32xf32> to vector<32xf32>
      %c0_84 = arith.constant 0 : index
      %c0_85 = arith.constant 0 : index
      %133 = vector.load %arg20[%c0_84, %c0_85] : memref<1x32xf32, #tpu.memory_space<vmem>>, vector<1x32xf32>
      %134 = vector.shape_cast %133 : vector<1x32xf32> to vector<32xf32>
      %cst_86 = arith.constant dense<0.000000e+00> : vector<8xf32>
      %135 = vector.multi_reduction <add>, %126, %cst_86 [1] : vector<8x32xf32> to vector<8xf32>
      %136 = vector.shape_cast %135 : vector<8xf32> to vector<8x1xf32>
      %cst_87 = arith.constant 3.200000e+01 : f32
      %137 = vector.broadcast %cst_87 : f32 to vector<8x1xf32>
      %138 = arith.divf %136, %137 : vector<8x1xf32>
      %139 = vector.broadcast %138 : vector<8x1xf32> to vector<8x32xf32>
      %140 = arith.subf %126, %139 : vector<8x32xf32>
      %141 = arith.mulf %140, %140 : vector<8x32xf32>
      %cst_88 = arith.constant dense<0.000000e+00> : vector<8xf32>
      %142 = vector.multi_reduction <add>, %141, %cst_88 [1] : vector<8x32xf32> to vector<8xf32>
      %143 = vector.shape_cast %142 : vector<8xf32> to vector<8x1xf32>
      %cst_89 = arith.constant 3.200000e+01 : f32
      %144 = vector.broadcast %cst_89 : f32 to vector<8x1xf32>
      %145 = arith.divf %143, %144 : vector<8x1xf32>
      %146 = vector.broadcast %138 : vector<8x1xf32> to vector<8x32xf32>
      %147 = arith.subf %126, %146 : vector<8x32xf32>
      %cst_90 = arith.constant 9.99999974E-6 : f32
      %148 = vector.broadcast %cst_90 : f32 to vector<8x1xf32>
      %149 = arith.addf %145, %148 : vector<8x1xf32>
      %150 = math.rsqrt %149 : vector<8x1xf32>
      %151 = vector.broadcast %150 : vector<8x1xf32> to vector<8x32xf32>
      %152 = arith.mulf %147, %151 : vector<8x32xf32>
      %153 = vector.shape_cast %132 : vector<32xf32> to vector<1x32xf32>
      %154 = vector.broadcast %153 : vector<1x32xf32> to vector<8x32xf32>
      %155 = arith.mulf %152, %154 : vector<8x32xf32>
      %156 = vector.shape_cast %134 : vector<32xf32> to vector<1x32xf32>
      %157 = vector.broadcast %156 : vector<1x32xf32> to vector<8x32xf32>
      %158 = arith.addf %155, %157 : vector<8x32xf32>
      %c0_91 = arith.constant 0 : index
      %c0_92 = arith.constant 0 : index
      %c0_93 = arith.constant 0 : index
      %159 = vector.load %arg21[%c0_91, %c0_92, %c0_93] : memref<1x8x32xf32, #tpu.memory_space<vmem>>, vector<1x8x32xf32>
      %160 = vector.shape_cast %159 : vector<1x8x32xf32> to vector<8x32xf32>
      %161 = vector.shape_cast %158 : vector<8x32xf32> to vector<1x8x32xf32>
      tpu.vector_store %arg21[%c0_91, %c0_92, %c0_93], %161 {strides = array<i32>} : memref<1x8x32xf32, #tpu.memory_space<vmem>>, vector<1x8x32xf32>,
    } else {
    }
    return
  }
  func.func @transform_0(%arg0: i32, %arg1: i32) -> (i32, i32, i32) {
    %c0_i32 = arith.constant 0 : i32
    %c0_i32_0 = arith.constant 0 : i32
    %c0_i32_1 = arith.constant 0 : i32
    return %arg0, %c0_i32, %c0_i32_0 : i32, i32, i32
  }
  func.func @transform_1(%arg0: i32, %arg1: i32) -> (i32, i32, i32, i32) {
    %c0_i32 = arith.constant 0 : i32
    %c0_i32_0 = arith.constant 0 : i32
    %c0_i32_1 = arith.constant 0 : i32
    %c0_i32_2 = arith.constant 0 : i32
    return %arg1, %c0_i32, %c0_i32_0, %c0_i32_1 : i32, i32, i32, i32
  }
  func.func @transform_2(%arg0: i32, %arg1: i32) -> (i32, i32, i32, i32) {
    %c0_i32 = arith.constant 0 : i32
    %c0_i32_0 = arith.constant 0 : i32
    %c0_i32_1 = arith.constant 0 : i32
    %c0_i32_2 = arith.constant 0 : i32
    return %arg1, %c0_i32, %c0_i32_0, %c0_i32_1 : i32, i32, i32, i32
  }
  func.func @transform_3(%arg0: i32, %arg1: i32) -> (i32, i32, i32, i32) {
    %c0_i32 = arith.constant 0 : i32
    %c0_i32_0 = arith.constant 0 : i32
    %c0_i32_1 = arith.constant 0 : i32
    %c0_i32_2 = arith.constant 0 : i32
    return %arg1, %c0_i32, %c0_i32_0, %c0_i32_1 : i32, i32, i32, i32
  }
  func.func @transform_4(%arg0: i32, %arg1: i32) -> (i32, i32, i32, i32) {
    %c0_i32 = arith.constant 0 : i32
    %c0_i32_0 = arith.constant 0 : i32
    %c0_i32_1 = arith.constant 0 : i32
    %c0_i32_2 = arith.constant 0 : i32
    return %arg1, %c0_i32, %c0_i32_0, %c0_i32_1 : i32, i32, i32, i32
  }
  func.func @transform_5(%arg0: i32, %arg1: i32) -> (i32, i32, i32, i32) {
    %c0_i32 = arith.constant 0 : i32
    %c0_i32_0 = arith.constant 0 : i32
    %c0_i32_1 = arith.constant 0 : i32
    %c0_i32_2 = arith.constant 0 : i32
    return %arg1, %c0_i32, %c0_i32_0, %c0_i32_1 : i32, i32, i32, i32
  }
  func.func @transform_6(%arg0: i32, %arg1: i32) -> (i32, i32, i32, i32) {
    %c0_i32 = arith.constant 0 : i32
    %c0_i32_0 = arith.constant 0 : i32
    %c0_i32_1 = arith.constant 0 : i32
    %c0_i32_2 = arith.constant 0 : i32
    return %arg1, %c0_i32, %c0_i32_0, %c0_i32_1 : i32, i32, i32, i32
  }
  func.func @transform_7(%arg0: i32, %arg1: i32) -> (i32, i32, i32, i32) {
    %c0_i32 = arith.constant 0 : i32
    %c0_i32_0 = arith.constant 0 : i32
    %c0_i32_1 = arith.constant 0 : i32
    %c0_i32_2 = arith.constant 0 : i32
    return %arg1, %c0_i32, %c0_i32_0, %c0_i32_1 : i32, i32, i32, i32
  }
  func.func @transform_8(%arg0: i32, %arg1: i32) -> (i32, i32, i32) {
    %c0_i32 = arith.constant 0 : i32
    %c0_i32_0 = arith.constant 0 : i32
    %c0_i32_1 = arith.constant 0 : i32
    return %arg1, %c0_i32, %c0_i32_0 : i32, i32, i32
  }
  func.func @transform_9(%arg0: i32, %arg1: i32) -> (i32, i32, i32) {
    %c0_i32 = arith.constant 0 : i32
    %c0_i32_0 = arith.constant 0 : i32
    %c0_i32_1 = arith.constant 0 : i32
    return %arg1, %c0_i32, %c0_i32_0 : i32, i32, i32
  }
  func.func @transform_10(%arg0: i32, %arg1: i32) -> (i32, i32, i32) {
    %c0_i32 = arith.constant 0 : i32
    %c0_i32_0 = arith.constant 0 : i32
    %c0_i32_1 = arith.constant 0 : i32
    return %arg1, %c0_i32, %c0_i32_0 : i32, i32, i32
  }
  func.func @transform_11(%arg0: i32, %arg1: i32) -> (i32, i32, i32) {
    %c0_i32 = arith.constant 0 : i32
    %c0_i32_0 = arith.constant 0 : i32
    %c0_i32_1 = arith.constant 0 : i32
    return %arg1, %c0_i32, %c0_i32_0 : i32, i32, i32
  }
  func.func @transform_12(%arg0: i32, %arg1: i32) -> (i32, i32, i32) {
    %c0_i32 = arith.constant 0 : i32
    %c0_i32_0 = arith.constant 0 : i32
    %c0_i32_1 = arith.constant 0 : i32
    return %arg1, %c0_i32, %c0_i32_0 : i32, i32, i32
  }
  func.func @transform_13(%arg0: i32, %arg1: i32) -> (i32, i32, i32) {
    %c0_i32 = arith.constant 0 : i32
    %c0_i32_0 = arith.constant 0 : i32
    %c0_i32_1 = arith.constant 0 : i32
    return %arg1, %c0_i32, %c0_i32_0 : i32, i32, i32
  }
  func.func @transform_14(%arg0: i32, %arg1: i32) -> (i32, i32, i32) {
    %c0_i32 = arith.constant 0 : i32
    %c0_i32_0 = arith.constant 0 : i32
    %c0_i32_1 = arith.constant 0 : i32
    return %arg1, %c0_i32, %c0_i32_0 : i32, i32, i32
  }
  func.func @transform_15(%arg0: i32, %arg1: i32) -> (i32, i32, i32) {
    %c0_i32 = arith.constant 0 : i32
    %c0_i32_0 = arith.constant 0 : i32
    %c0_i32_1 = arith.constant 0 : i32
    return %arg1, %c0_i32, %c0_i32_0 : i32, i32, i32
  }
  func.func @transform_16(%arg0: i32, %arg1: i32) -> (i32, i32, i32) {
    %c0_i32 = arith.constant 0 : i32
    %c0_i32_0 = arith.constant 0 : i32
    %c0_i32_1 = arith.constant 0 : i32
    return %arg1, %c0_i32, %c0_i32_0 : i32, i32, i32
  }
  func.func @transform_17(%arg0: i32, %arg1: i32) -> (i32, i32) {
    %c0_i32 = arith.constant 0 : i32
    %c0_i32_0 = arith.constant 0 : i32
    %c0_i32_1 = arith.constant 0 : i32
    return %c0_i32, %c0_i32_0 : i32, i32
  }
  func.func @transform_18(%arg0: i32, %arg1: i32) -> (i32, i32) {
    %c0_i32 = arith.constant 0 : i32
    %c0_i32_0 = arith.constant 0 : i32
    %c0_i32_1 = arith.constant 0 : i32
    return %c0_i32, %c0_i32_0 : i32, i32
  }
  func.func @transform_19(%arg0: i32, %arg1: i32) -> (i32, i32, i32) {
    %c0_i32 = arith.constant 0 : i32
    %c0_i32_0 = arith.constant 0 : i32
    %c0_i32_1 = arith.constant 0 : i32
    return %arg0, %c0_i32, %c0_i32_0 : i32, i32, i32
  }
}

</mosaic_0001>

<bundles_post_ra>
// kernel: tpu_custom_call.1
= control target key start
LH: loop header
LB: loop body
LE: loop exit
PB: predicated region body
PF: predicated region fallthrough
CT: control target
= control target key end

     0   :  { %s3967_s0 = inlined_call_operand.vmem [shape: f32[2,8,32], index: 0, kind: input, shape index: {}]   ;;  %s3968_s1 = inlined_call_operand.vmem [shape: bf16[2,4,32,8], index: 1, kind: input, shape index: {}]   ;;  %s3969_s2 = inlined_call_operand.vmem [shape: f32[2,4,1,8], index: 2, kind: input, shape index: {}]   ;;  %s3970_s3 = inlined_call_operand.vmem [shape: bf16[2,4,32,8], index: 3, kind: input, shape index: {}]   ;;  %s3971_s4 = inlined_call_operand.vmem [shape: f32[2,4,1,8], index: 4, kind: input, shape index: {}]   ;;  %s3972_s5 = inlined_call_operand.vmem [shape: bf16[2,4,32,8], index: 5, kind: input, shape index: {}]   ;;  %s3973_s6 = inlined_call_operand.vmem [shape: f32[2,4,1,8], index: 6, kind: input, shape index: {}]   ;;  %s3974_s7 = inlined_call_operand.vmem [shape: bf16[2,4,8,32], index: 7, kind: input, shape index: {}]   ;;  %s3975_s8 = inlined_call_operand.vmem [shape: f32[2,1,32], index: 8, kind: input, shape index: {}]   ;;  %s3976_s9 = inlined_call_operand.vmem [shape: f32[2,1,32], index: 9, kind: input, shape index: {}]   ;;  %s3977_s10 = inlined_call_operand.vmem [shape: f32[2,1,32], index: 10, kind: input, shape index: {}]   ;;  %s3978_s11 = inlined_call_operand.vmem [shape: bf16[2,32,64], index: 11, kind: input, shape index: {}]   ;;  %s3979_s12 = inlined_call_operand.vmem [shape: f32[2,1,64], index: 12, kind: input, shape index: {}]   ;;  %s3980_s13 = inlined_call_operand.vmem [shape: bf16[2,64,32], index: 13, kind: input, shape index: {}]   ;;  %s3981_s14 = inlined_call_operand.vmem [shape: f32[2,1,32], index: 14, kind: input, shape index: {}]   ;;  %s3982_s15 = inlined_call_operand.vmem [shape: f32[2,1,32], index: 15, kind: input, shape index: {}]   ;;  %s3983_s16 = inlined_call_operand.vmem [shape: f32[2,1,32], index: 16, kind: input, shape index: {}]   ;;  %s3984_s17 = inlined_call_operand.vmem [shape: f32[1,32], index: 17, kind: input, shape index: {}]   ;;  %s3985_s18 = inlined_call_operand.vmem [shape: f32[1,32], index: 18, kind: input, shape index: {}]   ;;  %s3986_s19 = inlined_call_operand.hbm [shape: f32[2,8,32], index: 19, kind: output, shape index: {}]  }
   0x1   :  { %4006 = sst [smem:[#allocation23_spill]] %s3967_s0 }
   0x2   :  { %4007 = sst [smem:[#allocation24_spill]] %s3968_s1 }
   0x3   :  { %4008 = sst [smem:[#allocation25_spill]] %s3969_s2 }
   0x4   :  { %4009 = sst [smem:[#allocation26_spill]] %s3970_s3 }
   0x5   :  { %4010 = sst [smem:[#allocation27_spill]] %s3971_s4 }
   0x6   :  { %4011 = sst [smem:[#allocation28_spill]] %s3972_s5 }
   0x7   :  { %4012 = sst [smem:[#allocation29_spill]] %s3973_s6 }
   0x8   :  { %4013 = sst [smem:[#allocation30_spill]] %s3974_s7 }
   0x9   :  { %4014 = sst [smem:[#allocation31_spill]] %s3978_s11 }
   0xa   :  { %4015 = sst [smem:[#allocation32_spill]] %s3983_s16 }
   0xb   :  { %4016 = sst [smem:[#allocation33_spill]] %s3984_s17 }
   0xc   :  { %4017 = sst [smem:[#allocation34_spill]] %s3985_s18 }
   0xd   :  { %4018 = sst [smem:[#allocation35_spill]] %s3986_s19 }
   0xe   :  { %24 = vsyncpa [#allocation4], 0 }
   0xf   :  { %26 = vsyncpa [#allocation4 + $0x1], 0  ;;  %s3484_s0 = smov 0   ;;  %s3486_s30 = smov 0  }
  0x10   :  { %s3488_s20 = smov 0   ;;  %s3490_s21 = smov 0  }
  0x11   :  { %s3492_s1 = smov 0   ;;  %s3494_s22 = smov 0  }
  0x12   :  { %s3496_s2 = smov 0   ;;  %s3498_s23 = smov 0  }
  0x13 LB: > { %4019 = sst [smem:[#allocation6_spill]] %s3351_s0  ;;  %s2793_s24 = sadd.s32 4294967295, %s3379_s23   ;;  %s3379_s23 = sphi %s3498_s23, %s32_s23   ;;  %s3375_s2 = sphi %s3496_s2, %s4074_s2   ;;  %s3371_s22 = sphi %s3494_s22, %s4073_s22   ;;  %s3367_s1 = sphi %s3492_s1, %s4072_s1   ;;  %s3363_s21 = sphi %s3490_s21, %s4071_s21   ;;  %s3359_s20 = sphi %s3488_s20, %s4070_s20   ;;  %s3355_s30 = sphi %s3486_s30, %s4069_s30   ;;  %s3351_s0 = sphi %s3484_s0, %s4068_s0  }
  0x14   : > { %4020 = sst [smem:[#allocation7_spill]] %s3355_s30  ;;  %s2794_s25 = sadd.s32 4294967294, %s3379_s23  }
  0x15   : > { %4021 = sst [smem:[#allocation8_spill]] %s3359_s20  ;;  %s41_s3 = sadd.s32 1, %s3371_s22 }
  0x16   : > { %4022 = sst [smem:[#allocation9_spill]] %s3363_s21  ;;  %p42_p0 = scmp.ge.s32.totalorder %s41_s3, 2 }
  0x17   : > { %4023 = sst [smem:[#allocation10_spill]] %s3367_s1  ;;  %s44_s26 = sadd.s32 1, %s3375_s2 }
  0x18   : > { %4024 = sst [smem:[#allocation11_spill]] %s3371_s22  ;;  %p545_p1 = scmp.ne.s32.totalorder %s3359_s20, %s3355_s30 }
  0x19   : > { %4025 = sst [smem:[#allocation12_spill]] %s3375_s2  ;;  %p546_p2 = scmp.eq.s32.totalorder %s2793_s24, 3 }
  0x1a   : > { %4026 = sst [smem:[#allocation13_spill]] %s3379_s23  ;;  %s4076_s3 = smov (%p42_p0, %s41_s3), 0 }
  0x1b   : > { %4027 = sst [smem:[#allocation14_spill]] %s4076_s3  ;;  %s4078_s26 = smov (!%p42_p0, %s44_s26), %s3375_s2 }
  0x1c   : > { %p3533_p3 = por %p546_p2, %p545_p1  ;;  %p551_p4 = scmp.ne.s32.totalorder %s3355_s30, %s3351_s0 }
  0x1d   : > { %p46_p5 = scmp.ge.s32.totalorder %s4078_s26, 2  ;;  %p552_p6 = scmp.eq.s32.totalorder %s2794_s25, 3 }
  0x1e   : > { %s4028_s27 = scalar_select %p3533_p3, 1, 0 }
  0x1f   : > { %p2797_p7 = scmp.ge.s32.totalorder %s3379_s23, 1  ;;  %p694_p8 = scmp.lt.s32.totalorder %s3379_s23, 5 }
  0x20   : > { %4029 = sst [smem:[#allocation15_spill]] %s4028_s27  ;;  %s4080_s26 = smov (%p46_p5, %s4078_s26), 0 }
  0x21   : > { %4030 = sst [smem:[#allocation16_spill]] %s4080_s26  ;;  %p3543_p9 = por %p552_p6, %p551_p4 }
  0x22   : > { %p695_p10 = pnand %p2797_p7, %p694_p8  ;;  %s532_s29 = ssub.s32 %s3375_s2, %s4080_s26 }
  0x23   : > { %s4031_s28 = scalar_select %p3543_p9, 1, 0 }
  0x24   : > { %s535_s24 = sadd.s32 1, %s3359_s20  ;;  %p533_p11 = scmp.eq.s32.totalorder %s532_s29, 0 }
  0x25   : > { %4032 = sst [smem:[#allocation17_spill]] %s4031_s28  ;;  %698 = sbr.rel (%p695_p10) target bundleno = 2710 (0xa96), region = 96 }
  0x26   : > { %s3551_s3 = scalar_select %p533_p11, %s3359_s20, %s535_s24  }
  0x28   : > { %4033 = sst [smem:[#allocation18_spill]] %s3551_s3 }
  0x2c   : > { %s3993_s25 = sand.u32 1, %s3355_s30   ;;  %p812_p12 = scmp.lt.s32.totalorder %s3367_s1, 1 }
  0x2d   : > { %s3557_s22 = sshll.u32 %s3993_s25, 3  ;;  %p816_p13 = scmp.lt.s32.totalorder %s3363_s21, 1 }
  0x2e   : > { %s813_s28 = scalar_select %p812_p12, %s3367_s1, 1 }
  0x2f   : > { %s3562_s0 = scalar_select %p816_p13, %s3363_s21, 1 }
  0x30   : > { %s2799_s29 = sshll.u32 %s813_s28, 3  ;;  %s4034_s2 = sld [smem:[#allocation23_spill]] }
  0x31   : > { %s2898_s20 = sshll.u32 %s3562_s0, 6  ;;  %s4035_s19 = sld [smem:[#allocation24_spill]] }
  0x32   : > { %s2802_s30 = sshll.u32 %s3562_s0, 2  ;;  %s4037_s17 = sld [smem:[#allocation25_spill]] }
  0x33   : > { %s4039_s26 = sld [smem:[#allocation26_spill]]  ;;  %s4041_s4 = sld [smem:[#allocation27_spill]] }
  0x34   : > { %s4043_s5 = sld [smem:[#allocation28_spill]]  ;;  %s4044_s6 = sld [smem:[#allocation29_spill]] }
  0x35   : > { %s2901_s16 = sshll.u32 %s3562_s0, 4  ;;  %s4045_s7 = sld [smem:[#allocation30_spill]] }
  0x36   : > { %s815_s3 = scalar_lea.vmem %s4034_s2, %s2799_s29  ;;  %s4046_s11 = sld [smem:[#allocation31_spill]] }
  0x37   : > { %s3571_s27 = scalar_lea.vmem %s4035_s19, %s2898_s20  ;;  %s4047_s18 = sld [smem:[#allocation32_spill]] }
  0x38   : > { %4036 = sst [smem:[#allocation19_spill]] %s3571_s27  ;;  %s3577_s21 = scalar_lea.vmem %s4037_s17, %s2802_s30 }
  0x39   : > { %4038 = sst [smem:[#allocation20_spill]] %s3577_s21  ;;  %s3582_s2 = scalar_lea.vmem %s4039_s26, %s2898_s20 }
  0x3a   : > { %4040 = sst [smem:[#allocation21_spill]] %s3582_s2  ;;  %s3587_s23 = scalar_lea.vmem %s4041_s4, %s2802_s30 }
  0x3b   : > { %4042 = sst [smem:[#allocation22_spill]] %s3587_s23  ;;  %s3592_s27 = scalar_lea.vmem %s4043_s5, %s2898_s20 }
  0x3c   : > { %s3597_s1 = scalar_lea.vmem %s4044_s6, %s2802_s30  ;;  %s3603_s21 = scalar_lea.vmem %s4045_s7, %s2901_s16 }
  0x3d   : > { %s3620_s5 = scalar_lea.vmem %s4046_s11, %s2901_s16  ;;  %s864_s6 = scalar_lea.vmem %s3979_s12, %s3562_s0 }
  0x3e   : > { %s2903_s7 = sshll.u32 %s3562_s0, 5  ;;  %s872_s4 = scalar_lea.vmem %s3981_s14, %s3562_s0 }
  0x3f   : > { %s3634_s20 = scalar_lea.vmem %s3980_s13, %s2903_s7  ;;  %s875_s30 = scalar_lea.vmem %s3982_s15, %s3562_s0 }
  0x40   : > { %s878_s11 = scalar_lea.vmem %s4047_s18, %s3562_s0  ;;  %s811_s28 = scalar_lea.vmem [#allocation3], %s3557_s22 }
  0x41   : > { %s4048_s26 = sld [smem:[#allocation9_spill]] }
  0x47   : > { %p2815_p0 = scmp.ne.s32.totalorder %s4048_s26, 0 }
  0x48   : > { %v884_v0 = vld [vmem:[%s815_s3] sm:$0xff] (!%p2815_p0)  ;;  %vm885_vm0 = vcmask (!%p2815_p0), 261120  }
  0x49   : > { %883 = sbr.rel (%p2815_p0) target bundleno = 80 (0x50), region = 100  ;;  %886 = vst.msk [vmem:[#allocation2] sm:$0xff] (!%p2815_p0), %vm885_vm0, %v884_v0 }
  0x50 PF: > { %s4049_s29 = sld [smem:[#allocation19_spill]]  ;;  %v3381_v2 = vmov 0.0   ;;  %vm3382_vm1 = vmmov 0   ;;  %v3658_v6 = vld [vmem:[#allocation2] sm:$0xff]  ;;  %vm945_vm2 = vcmask 261120   ;;  %s4050_s7 = sld [smem:[#allocation21_spill]] }
  0x51   : > { %2972 = vmatprep.subr.bf16.mxu0 %v3381_v2  ;;  %2980 = vmatprep.subr.bf16.mxu1 %v3381_v2  ;;  %v3662_v7 = vpack.c.bf16 %v3658_v6, %v3658_v6  ;;  %v3249_v20 = vld [vmem:[%s3592_s27] sm:$0xff]   ;;  %v3250_v21 = vld [vmem:[%s3592_s27 + $0x10] sm:$0xff]   ;;  %v3251_v22 = vld [vmem:[%s3592_s27 + $0x8] sm:$0xff]   ;;  %s4051_s3 = sld [smem:[#allocation22_spill]]  ;;  %vm1657_vm3 = vcmask 64512   ;;  %vm1901_vm4 = vcmask 1043456   ;;  %s4053_s18 = scalar_lea.vmem %s3975_s8, %s3562_s0 }
  0x52   : > { %2976 = vmatprep.mubr.msk.bf16.mxu0 %vm3382_vm1, %v3381_v2  ;;  %2984 = vmatprep.mubr.msk.bf16.mxu1 %vm3382_vm1, %v3381_v2  ;;  %v3252_v23 = vld [vmem:[%s3592_s27 + $0x18] sm:$0xff]   ;;  %v3253_v24 = vld [vmem:[%s3592_s27 + $0x20] sm:$0xff]   ;;  %v3254_v25 = vld [vmem:[%s3592_s27 + $0x30] sm:$0xff]   ;;  %s4054_s2 = scalar_lea.vmem %s3976_s9, %s3562_s0  ;;  %s4055_s25 = scalar_lea.vmem %s3977_s10, %s3562_s0  ;;  %vm2429_vm5 = vcmask 523264  }
  0x53   : > { %v3255_v26 = vld [vmem:[%s3592_s27 + $0x28] sm:$0xff]   ;;  %v3256_v27 = vld [vmem:[%s3592_s27 + $0x38] sm:$0xff]   ;;  %s4052_s27 = sld [smem:[#allocation20_spill]] }
  0x56   : > { %v3233_v1 = vld [vmem:[%s4049_s29] sm:$0xff]   ;;  %v3234_v3 = vld [vmem:[%s4049_s29 + $0x10] sm:$0xff]   ;;  %v3235_v4 = vld [vmem:[%s4049_s29 + $0x8] sm:$0xff]  }
  0x57   : > { %2973 = vmatpush3.bf16.msra.mxu0 %v3233_v1  ;;  %2981 = vmatpush3.bf16.msra.mxu1 %v3234_v3  ;;  %v3236_v5 = vld [vmem:[%s4049_s29 + $0x18] sm:$0xff]   ;;  %v3237_v8 = vld [vmem:[%s4049_s29 + $0x20] sm:$0xff]   ;;  %v3238_v9 = vld [vmem:[%s4049_s29 + $0x30] sm:$0xff]  }
  0x58   : > { %2974 = vmatprep.subr.bf16.mxu0 %v3381_v2  ;;  %2982 = vmatprep.subr.bf16.mxu1 %v3381_v2  ;;  %v3239_v10 = vld [vmem:[%s4049_s29 + $0x28] sm:$0xff]   ;;  %v3240_v11 = vld [vmem:[%s4049_s29 + $0x38] sm:$0xff]   ;;  %v3241_v12 = vld [vmem:[%s4050_s7] sm:$0xff]  }
  0x59   : > { %v3242_v13 = vld [vmem:[%s4050_s7 + $0x10] sm:$0xff]   ;;  %v3243_v14 = vld [vmem:[%s4050_s7 + $0x8] sm:$0xff]   ;;  %v3244_v15 = vld [vmem:[%s4050_s7 + $0x18] sm:$0xff]  }
  0x5a   : > { %v3245_v16 = vld [vmem:[%s4050_s7 + $0x20] sm:$0xff]   ;;  %v3246_v17 = vld [vmem:[%s4050_s7 + $0x30] sm:$0xff]   ;;  %v3247_v18 = vld [vmem:[%s4050_s7 + $0x28] sm:$0xff]  }
  0x5b   : > { %2975 = vmatpush3.bf16.msra.mxu0 %v3235_v4  ;;  %2983 = vmatpush3.bf16.msra.mxu1 %v3236_v5  ;;  %v3248_v19 = vld [vmem:[%s4050_s7 + $0x38] sm:$0xff]   ;;  %v2832_v44 = vld [vmem:[%s4051_s3] ss:$0 sm:$0xff]  ;;  %v2833_v45 = vld [vmem:[%s4051_s3 + $0x1] ss:$0 sm:$0xff] }
  0x5c   : > { %2988 = vmatprep.subr.bf16.mxu0 %v3381_v2  ;;  %2996 = vmatprep.subr.bf16.mxu1 %v3381_v2  ;;  %v2816_v56 = vld [vmem:[%s4052_s27] ss:$0 sm:$0xff]  ;;  %v2817_v59 = vld [vmem:[%s4052_s27 + $0x1] ss:$0 sm:$0xff]  ;;  %v2834_v62 = vld [vmem:[%s4051_s3 + $0x2] ss:$0 sm:$0xff] }
  0x5d   : > { %v2835_v0 = vld [vmem:[%s4051_s3 + $0x3] ss:$0 sm:$0xff] }
  0x5e   : > { %2977 = vmatmul.mubr.msk.bf16.vlgmr.msra.gmra.mrb[0].mxu0 %vm945_vm2, %v3662_v7  ;;  %2985 = vmatmul.mubr.msk.bf16.vlgmr.msra.gmra.mrb[0].mxu1 %vm945_vm2, %v3662_v7 }
  0x5f   : > { %2989 = vmatpush3.bf16.msra.mxu0 %v3237_v8  ;;  %2997 = vmatpush3.bf16.msra.mxu1 %v3238_v9 }
  0x60   : > { %2990 = vmatprep.subr.bf16.mxu0 %v3381_v2  ;;  %2998 = vmatprep.subr.bf16.mxu1 %v3381_v2 }
  0x61   : > { %2992 = vmatprep.mubr.msk.bf16.mxu0 %vm3382_vm1, %v3381_v2  ;;  %3000 = vmatprep.mubr.msk.bf16.mxu1 %vm3382_vm1, %v3381_v2 }
  0x63   : > { %2991 = vmatpush3.bf16.msra.mxu0 %v3239_v10  ;;  %2999 = vmatpush3.bf16.msra.mxu1 %v3240_v11 }
  0x64   : > { %3004 = vmatprep.subr.bf16.mxu0 %v3381_v2  ;;  %3012 = vmatprep.subr.bf16.mxu1 %v3381_v2 }
  0x66   : > { %2993 = vmatmul.mubr.msk.bf16.vlgmr.msra.gmra.mrb[4].mxu0 %vm945_vm2, %v3662_v7  ;;  %3001 = vmatmul.mubr.msk.bf16.vlgmr.msra.gmra.mrb[4].mxu1 %vm945_vm2, %v3662_v7 }
  0x67   : > { %3005 = vmatpush3.bf16.msra.mxu0 %v3241_v12  ;;  %3013 = vmatpush3.bf16.msra.mxu1 %v3242_v13 }
  0x68   : > { %3006 = vmatprep.subr.bf16.mxu0 %v3381_v2  ;;  %3014 = vmatprep.subr.bf16.mxu1 %v3381_v2 }
  0x69   : > { %3008 = vmatprep.mubr.msk.bf16.mxu0 %vm3382_vm1, %v3381_v2  ;;  %3016 = vmatprep.mubr.msk.bf16.mxu1 %vm3382_vm1, %v3381_v2 }
  0x6b   : > { %3007 = vmatpush3.bf16.msra.mxu0 %v3243_v14  ;;  %3015 = vmatpush3.bf16.msra.mxu1 %v3244_v15 }
  0x6c   : > { %3020 = vmatprep.subr.bf16.mxu0 %v3381_v2  ;;  %3028 = vmatprep.subr.bf16.mxu1 %v3381_v2 }
  0x6e   : > { %3009 = vmatmul.mubr.msk.bf16.vlgmr.msra.gmra.mrb[8].mxu0 %vm945_vm2, %v3662_v7  ;;  %3017 = vmatmul.mubr.msk.bf16.vlgmr.msra.gmra.mrb[8].mxu1 %vm945_vm2, %v3662_v7 }
  0x6f   : > { %3021 = vmatpush3.bf16.msra.mxu0 %v3245_v16  ;;  %3029 = vmatpush3.bf16.msra.mxu1 %v3246_v17  ;;  %v2818_v16 = vld [vmem:[%s4052_s27 + $0x2] ss:$0 sm:$0xff] }
  0x70   : > { %3022 = vmatprep.subr.bf16.mxu0 %v3381_v2  ;;  %3030 = vmatprep.subr.bf16.mxu1 %v3381_v2 }
  0x71   : > { %3024 = vmatprep.mubr.msk.bf16.mxu0 %vm3382_vm1, %v3381_v2  ;;  %3032 = vmatprep.mubr.msk.bf16.mxu1 %vm3382_vm1, %v3381_v2 }
  0x73   : > { %3023 = vmatpush3.bf16.msra.mxu0 %v3247_v18  ;;  %3031 = vmatpush3.bf16.msra.mxu1 %v3248_v19  ;;  %v2819_v19 = vld [vmem:[%s4052_s27 + $0x3] ss:$0 sm:$0xff]  ;;  %s4057_s27 = sld [smem:[#allocation9_spill]] }
  0x74   : > { %3036 = vmatprep.subr.bf16.mxu0 %v3381_v2  ;;  %3044 = vmatprep.subr.bf16.mxu1 %v3381_v2 }
  0x76   : > { %3025 = vmatmul.mubr.msk.bf16.vlgmr.msra.gmra.mrb[12].mxu0 %vm945_vm2, %v3662_v7  ;;  %3033 = vmatmul.mubr.msk.bf16.vlgmr.msra.gmra.mrb[12].mxu1 %vm945_vm2, %v3662_v7 }
  0x77   : > { %3037 = vmatpush3.bf16.msra.mxu0 %v3249_v20  ;;  %3040 = vmatprep.mubr.msk.bf16.mxu0 %vm3382_vm1, %v3381_v2 }
  0x78   : > { %3038 = vmatprep.subr.bf16.mxu0 %v3381_v2  ;;  %3048 = vmatprep.mubr.msk.bf16.mxu1 %vm3382_vm1, %v3381_v2 }
  0x79   : > { %3045 = vmatpush3.bf16.msra.mxu1 %v3250_v21  ;;  %p2891_p1 = scmp.ne.s32.totalorder %s4057_s27, 1 }
  0x7a   : > { %3046 = vmatprep.subr.bf16.mxu1 %v3381_v2 }
  0x7b   : > { %3039 = vmatpush3.bf16.msra.mxu0 %v3251_v22 }
  0x7c   : > { %3052 = vmatprep.subr.bf16.mxu0 %v3381_v2 }
  0x7d   : > { %3047 = vmatpush3.bf16.msra.mxu1 %v3252_v23 }
  0x7e   : > { %3041 = vmatmul.mubr.msk.bf16.vlgmr.msra.gmra.mrb[16].mxu0 %vm945_vm2, %v3662_v7  ;;  %3060 = vmatprep.subr.bf16.mxu1 %v3381_v2 }
  0x7f   : > { %3056 = vmatprep.mubr.msk.bf16.mxu0 %vm3382_vm1, %v3381_v2  ;;  %3053 = vmatpush3.bf16.msra.mxu0 %v3253_v24 }
  0x80   : > { %3049 = vmatmul.mubr.msk.bf16.vlgmr.msra.gmra.mrb[16].mxu1 %vm945_vm2, %v3662_v7  ;;  %3054 = vmatprep.subr.bf16.mxu0 %v3381_v2 }
  0x81   : > { %3061 = vmatpush3.bf16.msra.mxu1 %v3254_v25  ;;  %3064 = vmatprep.mubr.msk.bf16.mxu1 %vm3382_vm1, %v3381_v2 }
  0x82   : > { %3062 = vmatprep.subr.bf16.mxu1 %v3381_v2 }
  0x83   : > { %3055 = vmatpush3.bf16.msra.mxu0 %v3255_v26  ;;  %v2848_v26 = vld [vmem:[%s3597_s1] ss:$0 sm:$0xff] }
  0x84   : > { %3068 = vmatprep.subr.bf16.mxu0 %v3381_v2 }
  0x85   : > { %3063 = vmatpush3.bf16.msra.mxu1 %v3256_v27 }
  0x86   : > { %3074 = vmatprep.subr.bf16.mxu1 %v3381_v2  ;;  %3057 = vmatmul.mubr.msk.bf16.vlgmr.msra.gmra.mrb[20].mxu0 %vm945_vm2, %v3662_v7 }
  0x87   : > { %3070 = vmatprep.mubr.msk.bf16.mxu0 %vm3382_vm1, %v3381_v2 }
  0x88   : > { %3065 = vmatmul.mubr.msk.bf16.vlgmr.msra.gmra.mrb[20].mxu1 %vm945_vm2, %v3662_v7 }
  0x89   : > { %3076 = vmatprep.mubr.msk.bf16.mxu1 %vm3382_vm1, %v3381_v2 }
 0x131   : > { %v983_v28 = vpop.f32.mrb[0].mxu0  ;;  %v1035_v30 = vpop.f32.mrb[0].mxu1 }
 0x132   : > { %v2978_v29 = vpop.f32.mrb[1].mxu0  ;;  %v2986_v32 = vpop.f32.mrb[1].mxu1  ;;  %v984_v63 = vadd.f32 %v2816_v56, %v983_v28  ;;  %v1036_v1 = vadd.f32 %v2817_v59, %v1035_v30  ;;  %v2849_v28 = vld [vmem:[%s3597_s1 + $0x1] ss:$0 sm:$0xff] }
 0x133   : > { %v986_v31 = vpop.f32.mrb[2].mxu0  ;;  %v1038_v34 = vpop.f32.mrb[2].mxu1 }
 0x134   : > { %v2979_v33 = vpop.f32.mrb[3].mxu0  ;;  %v2987_v35 = vpop.f32.mrb[3].mxu1  ;;  %v1649_v11 = vpack.c.bf16 %v984_v63, %v984_v63  ;;  %v1650_v15 = vpack.c.bf16 %v1036_v1, %v1036_v1 }
 0x139   : > { %v1087_v36 = vpop.f32.mrb[4].mxu0  ;;  %v1139_v38 = vpop.f32.mrb[4].mxu1 }
 0x13a   : > { %v2994_v37 = vpop.f32.mrb[5].mxu0  ;;  %v3002_v40 = vpop.f32.mrb[5].mxu1  ;;  %v1088_v22 = vadd.f32 %v2818_v16, %v1087_v36  ;;  %v1140_v23 = vadd.f32 %v2819_v19, %v1139_v38 }
 0x13b   : > { %v1090_v39 = vpop.f32.mrb[6].mxu0  ;;  %v1142_v42 = vpop.f32.mrb[6].mxu1 }
 0x13c   : > { %v2995_v41 = vpop.f32.mrb[7].mxu0  ;;  %v3003_v43 = vpop.f32.mrb[7].mxu1  ;;  %v1651_v24 = vpack.c.bf16 %v1088_v22, %v1088_v22  ;;  %v1652_v25 = vpack.c.bf16 %v1140_v23, %v1140_v23 }
 0x141   : > { %v1235_v46 = vpop.f32.mrb[8].mxu0  ;;  %v1287_v48 = vpop.f32.mrb[8].mxu1 }
 0x142   : > { %v1236_v47 = vadd.f32 %v2832_v44, %v1235_v46  ;;  %v3010_v49 = vpop.f32.mrb[9].mxu0  ;;  %v1288_v50 = vadd.f32 %v2833_v45, %v1287_v48  ;;  %v3018_v52 = vpop.f32.mrb[9].mxu1 }
 0x143   : > { %v1238_v51 = vpop.f32.mrb[10].mxu0  ;;  %v1290_v55 = vpop.f32.mrb[10].mxu1 }
 0x144   : > { %v1653_v53 = vpack.c.bf16 %v1236_v47, %v1236_v47  ;;  %v3011_v54 = vpop.f32.mrb[11].mxu0  ;;  %v1654_v57 = vpack.c.bf16 %v1288_v50, %v1288_v50  ;;  %v3019_v58 = vpop.f32.mrb[11].mxu1 }
 0x146   : > { %v1662_v60 = vsel %vm1657_vm3, %v1653_v53, 0  ;;  %v1708_v61 = vsel %vm1657_vm3, %v1654_v57, 0 }
 0x147   : > { %3069 = vmatpush3.bf16.xpose.msra.mxu0 %v1662_v60  ;;  %3075 = vmatpush3.bf16.xpose.msra.mxu1 %v1708_v61 }
 0x148   : > { %3080 = vmatprep.subr.bf16.mxu0 %v3381_v2  ;;  %3086 = vmatprep.subr.bf16.mxu1 %v3381_v2 }
 0x149   : > { %v1339_v3 = vpop.f32.mrb[12].mxu0  ;;  %v1391_v5 = vpop.f32.mrb[12].mxu1 }
 0x14a   : > { %v1340_v4 = vadd.f32 %v2834_v62, %v1339_v3  ;;  %v3026_v7 = vpop.f32.mrb[13].mxu0  ;;  %v1392_v8 = vadd.f32 %v2835_v0, %v1391_v5  ;;  %v3034_v10 = vpop.f32.mrb[13].mxu1 }
 0x14b   : > { %v1342_v9 = vpop.f32.mrb[14].mxu0  ;;  %v1394_v14 = vpop.f32.mrb[14].mxu1 }
 0x14c   : > { %v1655_v12 = vpack.c.bf16 %v1340_v4, %v1340_v4  ;;  %v3027_v13 = vpop.f32.mrb[15].mxu0  ;;  %v1656_v17 = vpack.c.bf16 %v1392_v8, %v1392_v8  ;;  %v3035_v18 = vpop.f32.mrb[15].mxu1 }
 0x14e   : > { %v1754_v20 = vsel %vm1657_vm3, %v1655_v12, 0  ;;  %3071 = vmatmul.mubr.msk.bf16.vlgmr.msra.gmra.mrb[24].mxu0 %vm1657_vm3, %v1649_v11  ;;  %v1800_v21 = vsel %vm1657_vm3, %v1656_v17, 0  ;;  %3077 = vmatmul.mubr.msk.bf16.vlgmr.msra.gmra.mrb[24].mxu1 %vm1657_vm3, %v1650_v15 }
 0x14f   : > { %3081 = vmatpush3.bf16.xpose.msra.mxu0 %v1754_v20  ;;  %3087 = vmatpush3.bf16.xpose.msra.mxu1 %v1800_v21 }
 0x150   : > { %3082 = vmatprep.mubr.msk.bf16.mxu0 %vm3382_vm1, %v3381_v2  ;;  %3088 = vmatprep.mubr.msk.bf16.mxu1 %vm3382_vm1, %v3381_v2 }
 0x151   : > { %3092 = vmatprep.subr.bf16.mxu0 %v3381_v2  ;;  %3098 = vmatprep.subr.bf16.mxu1 %v3381_v2  ;;  %v1487_v27 = vpop.f32.mrb[16].mxu0 }
 0x152   : > { %v1488_v29 = vadd.f32 %v2848_v26, %v1487_v27  ;;  %v3042_v30 = vpop.f32.mrb[17].mxu0 }
 0x153   : > { %v1490_v31 = vpop.f32.mrb[18].mxu0  ;;  %v1539_v32 = vpop.f32.mrb[16].mxu1 }
 0x154   : > { %v1894_v33 = vpack.c.bf16 %v1488_v29, %v1488_v29  ;;  %v3043_v34 = vpop.f32.mrb[19].mxu0  ;;  %v1540_v35 = vadd.f32 %v2849_v28, %v1539_v32  ;;  %v3050_v36 = vpop.f32.mrb[17].mxu1 }
 0x155   : > { %v1542_v37 = vpop.f32.mrb[18].mxu1  ;;  %v2850_v34 = vld [vmem:[%s3597_s1 + $0x2] ss:$0 sm:$0xff] }
 0x156   : > { %3083 = vmatmul.mubr.msk.bf16.vlgmr.msra.gmra.mrb[28].mxu0 %vm1657_vm3, %v1651_v24  ;;  %3089 = vmatmul.mubr.msk.bf16.vlgmr.msra.gmra.mrb[28].mxu1 %vm1657_vm3, %v1652_v25  ;;  %v1903_v38 = vsel %vm1901_vm4, %v1894_v33, 0  ;;  %v1895_v39 = vpack.c.bf16 %v1540_v35, %v1540_v35  ;;  %v3051_v40 = vpop.f32.mrb[19].mxu1  ;;  %v2851_v37 = vld [vmem:[%s3597_s1 + $0x3] ss:$0 sm:$0xff] }
 0x157   : > { %3094 = vmatprep.mubr.msk.bf16.mxu0 %vm3382_vm1, %v3381_v2  ;;  %3100 = vmatprep.mubr.msk.bf16.mxu1 %vm3382_vm1, %v3381_v2 }
 0x158   : > { %3093 = vmatpush3.bf16.msra.mxu0 %v1903_v38  ;;  %v1949_v41 = vsel %vm1901_vm4, %v1895_v39, 0 }
 0x159   : > { %3104 = vmatprep.subr.bf16.mxu0 %v3381_v2  ;;  %3099 = vmatpush3.bf16.msra.mxu1 %v1949_v41  ;;  %v3788_v42 = vpop.f32.mrb[20].mxu0 }
 0x15a   : > { %3110 = vmatprep.subr.bf16.mxu1 %v3381_v2  ;;  %v3058_v44 = vpop.f32.mrb[21].mxu0  ;;  %v1592_v35 = vadd.f32 %v2850_v34, %v3788_v42 }
 0x15b   : > { %v3790_v43 = vpop.f32.mrb[20].mxu1  ;;  %v1594_v46 = vpop.f32.mrb[22].mxu0 }
 0x15c   : > { %v3066_v45 = vpop.f32.mrb[21].mxu1  ;;  %v3059_v48 = vpop.f32.mrb[23].mxu0  ;;  %v1896_v39 = vpack.c.bf16 %v1592_v35, %v1592_v35  ;;  %v1644_v40 = vadd.f32 %v2851_v37, %v3790_v43  ;;  %v2087_v43 = vld [vmem:[%s3603_s21] sm:$0xf] }
 0x15d   : > { %v1646_v47 = vpop.f32.mrb[22].mxu1 }
 0x15e   : > { %v3067_v49 = vpop.f32.mrb[23].mxu1  ;;  %v1995_v47 = vsel %vm1901_vm4, %v1896_v39, 0  ;;  %v1897_v48 = vpack.c.bf16 %v1644_v40, %v1644_v40 }
 0x221   : > { %v1698_v50 = vpop.f32.mrb[24].mxu0  ;;  %v1744_v52 = vpop.f32.mrb[24].mxu1 }
 0x222   : > { %v1842_v51 = vmul.f32 0.35355338, %v1698_v50  ;;  %v3072_v53 = vpop.f32.mrb[25].mxu0  ;;  %v3078_v54 = vpop.f32.mrb[25].mxu1  ;;  %v1843_v56 = vmul.f32 0.35355338, %v1744_v52 }
 0x223   : > { %v1701_v55 = vpop.f32.mrb[26].mxu0  ;;  %v1747_v57 = vpop.f32.mrb[26].mxu1  ;;  %v2095_v54 = vsel %vm1901_vm4, %v2087_v43, 0 }
 0x224   : > { %v3073_v58 = vpop.f32.mrb[27].mxu0  ;;  %v1846_v59 = vsel %vm1657_vm3, %v1842_v51, -inf  ;;  %v3079_v60 = vpop.f32.mrb[27].mxu1  ;;  %v1849_v61 = vsel %vm1657_vm3, %v1843_v56, -inf }
 0x225   : > { %1847 = vmax.xlane.f32.xlu0 %v1846_v59  ;;  %v2088_v58 = vld [vmem:[%s3603_s21 + $0x4] sm:$0xf]  ;;  %v2089_v60 = vld [vmem:[%s3603_s21 + $0x8] sm:$0xf] }
 0x226   : > { %v2141_v59 = vsel %vm1901_vm4, %v2088_v58, 0 }
 0x229   : > { %1850 = vmax.xlane.f32.xlu0 %v1849_v61  ;;  %v1790_v62 = vpop.f32.mrb[28].mxu0  ;;  %v1836_v63 = vpop.f32.mrb[28].mxu1 }
 0x22a   : > { %v1844_v0 = vmul.f32 0.35355338, %v1790_v62  ;;  %v3084_v1 = vpop.f32.mrb[29].mxu0  ;;  %v3090_v3 = vpop.f32.mrb[29].mxu1  ;;  %v1845_v5 = vmul.f32 0.35355338, %v1836_v63 }
 0x22b   : > { %v1793_v4 = vpop.f32.mrb[30].mxu0  ;;  %v1839_v7 = vpop.f32.mrb[30].mxu1  ;;  %v2090_v3 = vld [vmem:[%s3603_s21 + $0xc] sm:$0xf] }
 0x22c   : > { %v3085_v8 = vpop.f32.mrb[31].mxu0  ;;  %v1852_v9 = vsel %vm1657_vm3, %v1844_v0, -inf  ;;  %v3091_v10 = vpop.f32.mrb[31].mxu1  ;;  %v1855_v11 = vsel %vm1657_vm3, %v1845_v5, -inf }
 0x22d   : > { %1853 = vmax.xlane.f32.xlu1 %v1852_v9  ;;  %v2233_v9 = vsel %vm1901_vm4, %v2090_v3, 0 }
 0x231   : > { %1856 = vmax.xlane.f32.xlu1 %v1855_v11 }
 0x2b2   : > { %v1848_v12 = vpop.xlane.xlu0 %1847 }
 0x2b3   : > { %v1858_v13 = vsub.f32 %v1842_v51, %v1848_v12  ;;  %v2041_v51 = vsel %vm1901_vm4, %v1897_v48, 0 }
 0x2b5   : > { %v1862_v14 = vmul.f32 1.442695, %v1858_v13 }
 0x2b6   : > { %v1851_v15 = vpop.xlane.xlu0 %1850 }
 0x2b7   : > { %3263 = vpow2.f32 %v1862_v14  ;;  %v1859_v16 = vsub.f32 %v1843_v56, %v1851_v15 }
 0x2b9   : > { %v1864_v17 = vmul.f32 1.442695, %v1859_v16 }
 0x2ba   : > { %v1854_v18 = vpop.xlane.xlu1 %1853 }
 0x2bb   : > { %3265 = vpow2.f32 %v1864_v17  ;;  %v1860_v19 = vsub.f32 %v1844_v0, %v1854_v18  ;;  %v2187_v0 = vsel %vm1901_vm4, %v2089_v60, 0 }
 0x2bd   : > { %v1866_v20 = vmul.f32 1.442695, %v1860_v19 }
 0x2be   : > { %v1857_v21 = vpop.xlane.xlu1 %1856 }
 0x2bf   : > { %3267 = vpow2.f32 %v1866_v20  ;;  %v1861_v22 = vsub.f32 %v1845_v5, %v1857_v21 }
 0x2c1   : > { %v3264_v23 = vpop.eup %3263  ;;  %v1868_v24 = vmul.f32 1.442695, %v1861_v22 }
 0x2c2   : > { %v1870_v25 = vsel %vm1657_vm3, %v3264_v23, 0.0 }
 0x2c3   : > { %3269 = vpow2.f32 %v1868_v24  ;;  %1871 = vadd.xlane.f32.xlu0 %v1870_v25 }
 0x2c5   : > { %v3266_v26 = vpop.eup %3265 }
 0x2c6   : > { %v1873_v27 = vsel %vm1657_vm3, %v3266_v26, 0.0 }
 0x2c7   : > { %1874 = vadd.xlane.f32.xlu1 %v1873_v27 }
 0x2c9   : > { %v3268_v28 = vpop.eup %3267 }
 0x2ca   : > { %v1876_v29 = vsel %vm1657_vm3, %v3268_v28, 0.0 }
 0x2cb   : > { %1877 = vadd.xlane.f32.xlu0 %v1876_v29 }
 0x2cd   : > { %v3270_v30 = vpop.eup %3269 }
 0x2ce   : > { %v1879_v31 = vsel %vm1657_vm3, %v3270_v30, 0.0 }
 0x2cf   : > { %1880 = vadd.xlane.f32.xlu1 %v1879_v31 }
 0x350   : > { %v1872_v32 = vpop.xlane.xlu0 %1871 }
 0x351   : > { %3271 = vrcp.f32 %v1872_v32 }
 0x354   : > { %v1875_v33 = vpop.xlane.xlu1 %1874 }
 0x355   : > { %3273 = vrcp.f32 %v1875_v33 }
 0x358   : > { %v1878_v36 = vpop.xlane.xlu0 %1877 }
 0x359   : > { %3275 = vrcp.f32 %v1878_v36 }
 0x35b   : > { %v3272_v38 = vpop.eup %3271 }
 0x35c   : > { %v1886_v41 = vmul.f32 %v3272_v38, %v3264_v23  ;;  %v1881_v44 = vpop.xlane.xlu1 %1880 }
 0x35d   : > { %3277 = vrcp.f32 %v1881_v44 }
 0x35e   : > { %v1890_v45 = vpack.c.bf16 %v1886_v41, %v1886_v41  ;;  %v2876_v41 = vld [vmem:[%s4053_s18] ss:$0 sm:$0xff]  ;;  %s4059_s18 = sld [smem:[#allocation34_spill]] (!%p2891_p1) }
 0x35f   : > { %v3274_v46 = vpop.eup %3273 }
 0x360   : > { %v1887_v49 = vmul.f32 %v3274_v46, %v3266_v26  ;;  %3095 = vmatmul.mubr.msk.bf16.vlgmr.msra.gmra.mrb[32].mxu0 %vm1657_vm3, %v1890_v45 }
 0x361   : > { %3105 = vmatpush3.bf16.msra.mxu0 %v1995_v47  ;;  %3106 = vmatprep.mubr.msk.bf16.mxu0 %vm3382_vm1, %v3381_v2 }
 0x362   : > { %v1891_v42 = vpack.c.bf16 %v1887_v49, %v1887_v49  ;;  %3116 = vmatprep.subr.bf16.mxu0 %v3381_v2 }
 0x363   : > { %v3276_v50 = vpop.eup %3275 }
 0x364   : > { %v1888_v52 = vmul.f32 %v3276_v50, %v3268_v28  ;;  %3101 = vmatmul.mubr.msk.bf16.vlgmr.msra.gmra.mrb[32].mxu1 %vm1657_vm3, %v1891_v42 }
 0x365   : > { %3111 = vmatpush3.bf16.msra.mxu1 %v2041_v51  ;;  %3112 = vmatprep.mubr.msk.bf16.mxu1 %vm3382_vm1, %v3381_v2 }
 0x366   : > { %v1892_v53 = vpack.c.bf16 %v1888_v52, %v1888_v52  ;;  %3122 = vmatprep.subr.bf16.mxu1 %v3381_v2 }
 0x367   : > { %v3278_v55 = vpop.eup %3277 }
 0x368   : > { %v1889_v56 = vmul.f32 %v3278_v55, %v3270_v30  ;;  %3107 = vmatmul.mubr.msk.bf16.vlgmr.msra.gmra.mrb[36].mxu0 %vm1657_vm3, %v1892_v53  ;;  %v3258_v55 = vld [vmem:[%s3620_s5 + $0x8] sm:$0xff]  }
 0x369   : > { %3117 = vmatpush3.bf16.msra.mxu0 %v2095_v54  ;;  %3118 = vmatprep.mubr.msk.bf16.mxu0 %vm3382_vm1, %v3381_v2  ;;  %v3257_v54 = vld [vmem:[%s3620_s5] sm:$0xff]  }
 0x36a   : > { %v1893_v57 = vpack.c.bf16 %v1889_v56, %v1889_v56  ;;  %3128 = vmatprep.subr.bf16.mxu0 %v3381_v2  ;;  %v3260_v56 = vld [vmem:[%s3634_s20 + $0x8] sm:$0xff]  }
 0x36c   : > { %3113 = vmatmul.mubr.msk.bf16.vlgmr.msra.gmra.mrb[36].mxu1 %vm1657_vm3, %v1893_v57 }
 0x36d   : > { %3124 = vmatprep.mubr.msk.bf16.mxu1 %vm3382_vm1, %v3381_v2  ;;  %3123 = vmatpush3.bf16.msra.mxu1 %v2141_v59 }
 0x36e   : > { %3134 = vmatprep.subr.bf16.mxu1 %v3381_v2 }
 0x433   : > { %v1939_v61 = vpop.f32.mrb[32].mxu0 }
 0x434   : > { %v2083_v62 = vpack.c.bf16 %v1939_v61, %v1939_v61  ;;  %v3096_v63 = vpop.f32.mrb[33].mxu0  ;;  %v2877_v61 = vld [vmem:[%s4054_s2] ss:$0 sm:$0xff] }
 0x435   : > { %v1942_v1 = vpop.f32.mrb[34].mxu0  ;;  %v2878_v63 = vld [vmem:[%s4055_s25] ss:$0 sm:$0xff] }
 0x436   : > { %v3097_v4 = vpop.f32.mrb[35].mxu0  ;;  %3119 = vmatmul.mubr.msk.bf16.vlgmr.msra.gmra.mrb[40].mxu0 %vm1657_vm3, %v2083_v62 }
 0x437   : > { %v1985_v5 = vpop.f32.mrb[32].mxu1  ;;  %3129 = vmatpush3.bf16.msra.mxu0 %v2187_v0  ;;  %3130 = vmatprep.mubr.msk.bf16.mxu0 %vm3382_vm1, %v3381_v2  ;;  %v3261_v4 = vld [vmem:[%s3634_s20 + $0x10] sm:$0xff]  }
 0x438   : > { %v2084_v7 = vpack.c.bf16 %v1985_v5, %v1985_v5  ;;  %v3102_v8 = vpop.f32.mrb[33].mxu1  ;;  %3140 = vmatprep.subr.bf16.mxu0 %v3381_v2  ;;  %v3262_v5 = vld [vmem:[%s3634_s20 + $0x18] sm:$0xff]  }
 0x439   : > { %v1988_v10 = vpop.f32.mrb[34].mxu1 }
 0x43a   : > { %v3103_v11 = vpop.f32.mrb[35].mxu1  ;;  %3125 = vmatmul.mubr.msk.bf16.vlgmr.msra.gmra.mrb[40].mxu1 %vm1657_vm3, %v2084_v7  ;;  %v2879_v7 = vld [vmem:[%s864_s6] ss:$0 sm:$0xff] }
 0x43b   : > { %v2031_v12 = vpop.f32.mrb[36].mxu0  ;;  %3135 = vmatpush3.bf16.msra.mxu1 %v2233_v9  ;;  %3136 = vmatprep.mubr.msk.bf16.mxu1 %vm3382_vm1, %v3381_v2 }
 0x43c   : > { %v2085_v13 = vpack.c.bf16 %v2031_v12, %v2031_v12  ;;  %v3108_v14 = vpop.f32.mrb[37].mxu0  ;;  %3148 = vmatprep.subr.bf16.mxu1 %v3381_v2 }
 0x43d   : > { %v2034_v15 = vpop.f32.mrb[38].mxu0 }
 0x43e   : > { %v3109_v16 = vpop.f32.mrb[39].mxu0  ;;  %3131 = vmatmul.mubr.msk.bf16.vlgmr.msra.gmra.mrb[44].mxu0 %vm1657_vm3, %v2085_v13 }
 0x43f   : > { %v2077_v17 = vpop.f32.mrb[36].mxu1  ;;  %3144 = vmatprep.mubr.msk.bf16.mxu0 %vm3382_vm1, %v3381_v2  ;;  %3141 = vmatpush3.bf16.msra.mxu0 %v3257_v54 }
 0x440   : > { %v2086_v18 = vpack.c.bf16 %v2077_v17, %v2077_v17  ;;  %v3114_v19 = vpop.f32.mrb[37].mxu1  ;;  %3142 = vmatprep.subr.bf16.mxu0 %v3381_v2 }
 0x441   : > { %v2080_v20 = vpop.f32.mrb[38].mxu1 }
 0x442   : > { %v3115_v21 = vpop.f32.mrb[39].mxu1  ;;  %3137 = vmatmul.mubr.msk.bf16.vlgmr.msra.gmra.mrb[44].mxu1 %vm1657_vm3, %v2086_v18 }
 0x443   : > { %3156 = vmatprep.mubr.msk.bf16.mxu1 %vm3382_vm1, %v3381_v2  ;;  %3143 = vmatpush3.bf16.msra.mxu0 %v3258_v55 }
 0x509   : > { %v2131_v22 = vpop.f32.mrb[40].mxu0 }
 0x50a   : > { %v3120_v23 = vpop.f32.mrb[41].mxu0  ;;  %v2275_v27 = vsel %vm945_vm2, %v2131_v22, 0.0 }
 0x50b   : > { %v2134_v24 = vpop.f32.mrb[42].mxu0 }
 0x50c   : > { %v3121_v25 = vpop.f32.mrb[43].mxu0 }
 0x50d   : > { %v2177_v26 = vpop.f32.mrb[40].mxu1 }
 0x50e   : > { %v2276_v28 = vsel %vm945_vm2, %v2177_v26, 0.0  ;;  %v3126_v29 = vpop.f32.mrb[41].mxu1 }
 0x50f   : > { %v2277_v30 = vadd.f32 %v2276_v28, %v2275_v27  ;;  %v2180_v31 = vpop.f32.mrb[42].mxu1 }
 0x510   : > { %v3127_v32 = vpop.f32.mrb[43].mxu1  ;;  %v2889_v31 = vld [vmem:[%s875_s30] ss:$0 sm:$0xff]  ;;  %s4058_s30 = sld [smem:[#allocation33_spill]] (!%p2891_p1) }
 0x511   : > { %v2223_v33 = vpop.f32.mrb[44].mxu0 }
 0x512   : > { %v2278_v34 = vsel %vm945_vm2, %v2223_v33, 0.0  ;;  %v3132_v35 = vpop.f32.mrb[45].mxu0  ;;  %v2890_v33 = vld [vmem:[%s878_s11] ss:$0 sm:$0xff] }
 0x513   : > { %v2279_v36 = vadd.f32 %v2278_v34, %v2277_v30  ;;  %v2226_v37 = vpop.f32.mrb[46].mxu0 }
 0x514   : > { %v3133_v38 = vpop.f32.mrb[47].mxu0 }
 0x515   : > { %v2269_v39 = vpop.f32.mrb[44].mxu1 }
 0x516   : > { %v2280_v40 = vsel %vm945_vm2, %v2269_v39, 0.0  ;;  %v3138_v44 = vpop.f32.mrb[45].mxu1 }
 0x517   : > { %v2281_v45 = vadd.f32 %v2280_v40, %v2279_v36  ;;  %v2272_v46 = vpop.f32.mrb[46].mxu1 }
 0x518   : > { %v3139_v47 = vpop.f32.mrb[47].mxu1 }
 0x519   : > { %v2289_v48 = vadd.f32 %v2876_v41, %v2281_v45 }
 0x51b   : > { %v2290_v49 = vadd.f32 %v2289_v48, %v3658_v6  ;;  %v3259_v6 = vld [vmem:[%s3634_s20] sm:$0xff]  }
 0x51c   : > { %3149 = vmatpush3.bf16.msra.mxu1 %v3259_v6  ;;  %v2892_v48 = vld [vmem:[%s4058_s30] ss:$0 sm:$0xff] (!%p2891_p1) }
 0x51d   : > { %v2293_v42 = vsel %vm945_vm2, %v2290_v49, 0.0  ;;  %3150 = vmatprep.subr.bf16.mxu1 %v3381_v2 }
 0x51e   : > { %2294 = vadd.xlane.f32.xlu0 %v2293_v42  ;;  %v2893_v42 = vld [vmem:[%s4059_s18] ss:$0 sm:$0xff] (!%p2891_p1) }
 0x520   : > { %3151 = vmatpush3.bf16.msra.mxu1 %v3260_v56 }
 0x521   : > { %3152 = vmatprep.subr.bf16.mxu1 %v3381_v2 }
 0x524   : > { %3153 = vmatpush3.bf16.msra.mxu1 %v3261_v4 }
 0x525   : > { %3154 = vmatprep.subr.bf16.mxu1 %v3381_v2  ;;  %v2883_v2 = vld [vmem:[%s872_s4] ss:$0 sm:$0xff] }
 0x528   : > { %3155 = vmatpush3.bf16.msra.mxu1 %v3262_v5 }
 0x5ab   : > { %v2295_v50 = vpop.xlane.xlu0 %2294 }
 0x5ac   : > { %v2297_v43 = vmul.f32 0.03125, %v2295_v50 }
 0x5ae   : > { %v2298_v51 = vsub.f32 %v2290_v49, %v2297_v43 }
 0x5b0   : > { %v2299_v52 = vmul.f32 %v2298_v51, %v2298_v51 }
 0x5b2   : > { %v2300_v53 = vsel %vm945_vm2, %v2299_v52, 0.0 }
 0x5b3   : > { %2301 = vadd.xlane.f32.xlu1 %v2300_v53 }
 0x640   : > { %v2302_v57 = vpop.xlane.xlu1 %2301 }
 0x641   : > { %v2303_v58 = vmul.f32 0.03125, %v2302_v57 }
 0x643   : > { %v2304_v59 = vadd.f32 1e-05, %v2303_v58 }
 0x645   : > { %3279 = vrsqrt.f32 %v2304_v59 }
 0x64f   : > { %v3280_v60 = vpop.eup %3279 }
 0x650   : > { %v2306_v62 = vmul.f32 %v3280_v60, %v2298_v51 }
 0x652   : > { %v2313_v0 = vmul.f32 %v2877_v61, %v2306_v62 }
 0x654   : > { %v2320_v1 = vadd.f32 %v2878_v63, %v2313_v0 }
 0x656   : > { %v2321_v3 = vpack.c.bf16 %v2320_v1, %v2320_v1 }
 0x658   : > { %3145 = vmatmul.mubr.msk.bf16.vlgmr.msra.gmra.mrb[48].mxu0 %vm945_vm2, %v2321_v3 }
 0x72b   : > { %v2382_v8 = vpop.f32.mrb[48].mxu0 }
 0x72c   : > { %v2383_v9 = vadd.f32 %v2879_v7, %v2382_v8  ;;  %v3146_v10 = vpop.f32.mrb[49].mxu0 }
 0x72d   : > { %v2385_v11 = vpop.f32.mrb[50].mxu0 }
 0x72e   : > { %v2388_v12 = vmax.f32 %v2383_v9, 0.0  ;;  %v3147_v13 = vpop.f32.mrb[51].mxu0 }
 0x730   : > { %v2389_v14 = vpack.c.bf16 %v2388_v12, %v2388_v12 }
 0x732   : > { %3157 = vmatmul.mubr.msk.bf16.vlgmr.msra.gmra.mrb[48].mxu1 %vm2429_vm5, %v2389_v14 }
 0x805   : > { %v2467_v15 = vpop.f32.mrb[48].mxu1 }
 0x806   : > { %v2468_v16 = vadd.f32 %v2883_v2, %v2467_v15  ;;  %v3158_v17 = vpop.f32.mrb[49].mxu1 }
 0x807   : > { %v2470_v18 = vpop.f32.mrb[50].mxu1 }
 0x808   : > { %v3159_v19 = vpop.f32.mrb[51].mxu1  ;;  %v2473_v20 = vadd.f32 %v2468_v16, %v2320_v1 }
 0x80a   : > { %v2476_v21 = vsel %vm945_vm2, %v2473_v20, 0.0 }
 0x80b   : > { %2477 = vadd.xlane.f32.xlu0 %v2476_v21 }
 0x898   : > { %v2478_v22 = vpop.xlane.xlu0 %2477 }
 0x899   : > { %v2479_v23 = vmul.f32 0.03125, %v2478_v22 }
 0x89b   : > { %v2480_v24 = vsub.f32 %v2473_v20, %v2479_v23 }
 0x89d   : > { %v2481_v25 = vmul.f32 %v2480_v24, %v2480_v24 }
 0x89f   : > { %v2482_v26 = vsel %vm945_vm2, %v2481_v25, 0.0 }
 0x8a0   : > { %2483 = vadd.xlane.f32.xlu1 %v2482_v26 }
 0x92d   : > { %v2484_v27 = vpop.xlane.xlu1 %2483 }
 0x92e   : > { %v2485_v28 = vmul.f32 0.03125, %v2484_v27 }
 0x930   : > { %v2486_v29 = vadd.f32 1e-05, %v2485_v28 }
 0x932   : > { %3281 = vrsqrt.f32 %v2486_v29 }
 0x93c   : > { %v3282_v30 = vpop.eup %3281 }
 0x93d   : > { %v2488_v32 = vmul.f32 %v3282_v30, %v2480_v24  ;;  %2507 = sbr.rel (%p2891_p1) target bundleno = 2685 (0xa7d), region = 104 }
 0x93f   : > { %v2495_v34 = vmul.f32 %v2889_v31, %v2488_v32 }
 0x941   : > { %v2502_v35 = vadd.f32 %v2890_v33, %v2495_v34 }
 0x943   : > { %2503 = vst.msk [vmem:[#allocation2] sm:$0xff] %vm945_vm2, %v2502_v35  ;;  %v2510_v36 = vsel (!%p2891_p1), %vm945_vm2, %v2502_v35, 0.0 }
 0x944   : > { %2511 = vadd.xlane.f32.xlu0 %v2510_v36 }
 0x9d1   : > { %v2512_v37 = vpop.xlane.xlu0 %2511 }
 0x9d2   : > { %v2513_v38 = vmul.f32 0.03125, %v2512_v37 }
 0x9d4   : > { %v2514_v39 = vsub.f32 %v2502_v35, %v2513_v38 }
 0x9d6   : > { %v2515_v40 = vmul.f32 %v2514_v39, %v2514_v39 }
 0x9d8   : > { %v2516_v41 = vsel %vm945_vm2, %v2515_v40, 0.0 }
 0x9d9   : > { %2517 = vadd.xlane.f32.xlu0 %v2516_v41 }
 0xa66   : > { %v2518_v44 = vpop.xlane.xlu0 %2517 }
 0xa67   : > { %v2519_v45 = vmul.f32 0.03125, %v2518_v44 }
 0xa69   : > { %v2520_v46 = vadd.f32 1e-05, %v2519_v45 }
 0xa6b   : > { %3283 = vrsqrt.f32 %v2520_v46 }
 0xa75   : > { %v3284_v47 = vpop.eup %3283 }
 0xa76   : > { %v2522_v49 = vmul.f32 %v3284_v47, %v2514_v39 }
 0xa78   : > { %v2529_v50 = vmul.f32 %v2892_v48, %v2522_v49 }
 0xa7a   : > { %v2536_v43 = vadd.f32 %v2893_v42, %v2529_v50 }
 0xa7c   : > { %2537 = vst.msk [vmem:[%s811_s28] sm:$0xff] %vm945_vm2, %v2536_v43 }
 0xa7d PF: > { %s4060_s5 = sld [smem:[#allocation10_spill]]  ;;  %s4061_s24 = sld [smem:[#allocation7_spill]] }
 0xa7e   : > { %s4063_s16 = sld [smem:[#allocation35_spill]]  ;;  %s2552_s26 = sshll.u32 %s811_s28, 4  ;;  %s2553_s26 = int_to_ptr.vmem [resolvable:$true] %s2552_s26 }
 0xa7f   : > { %s3285_s6 = scalar_lea.vmem %s2553_s26, 128  ;;  %s3383_s20 = smov [#allocation3]  }
 0xa80   : > { %p3286_p2 = scmp.ne.s32.totalorder %s2553_s26, %s3285_s6  ;;  %s3289_s7 = sshll.u32 %s3383_s20, 4  ;;  %s3290_s7 = int_to_ptr.vmem [resolvable:$false] %s3289_s7 }
 0xa81   : > { %s3291_s3 = scalar_lea.vmem %s3290_s7, 256  ;;  %p3292_p6 = scmp.lt.s32.totalorder %s2553_s26, %s3290_s7 }
 0xa82   : > { %p3287_p4 = pnand %p3286_p2, %p3533_p3  ;;  %p3293_p7 = scmp.lt.s32.totalorder %s3291_s3, %s3285_s6 }
 0xa83   : > { %s2895_s23 = sshll.u32 %s4060_s5, 7  ;;  %s4064_s29 = sand.u32 1, %s4061_s24  }
 0xa84   : > { %s3916_s17 = scalar_lea.hbm %s4063_s16, %s2895_s23  ;;  %s2539_s4 = scalar_lea.sflag [#allocation4], %s4064_s29 }
 0xa85   : > { %p3288_p5 = pneg %p3287_p4  ;;  %p3294_p8 = por %p3293_p7, %p3292_p6 }
 0xa87   : > { %p3295_p10 = pnand %p3294_p8, %p3288_p5 }
 0xa89   : > { %3298 = shalt.err (!%p3295_p10)
}
 0xa8a   : > { %s3299_s22 = scalar_lea.hbm %s3916_s17, 128  ;;  %s3303_s11 = scalar_lea.hbm %s4063_s16, 256 }
 0xa8b   : > { %p3300_p11 = scmp.ne.s32.totalorder %s3916_s17, %s3299_s22  ;;  %p3304_p0 = scmp.lt.u32.totalorder %s3916_s17, %s4063_s16 }
 0xa8c   : > { %p3305_p1 = scmp.lt.u32.totalorder %s3303_s11, %s3299_s22  ;;  %p3307_p4 = scmp.lt.u32.totalorder %s3299_s22, %s3916_s17 }
 0xa8d   : > { %p3301_p12 = pnand %p3300_p11, %p3533_p3 }
 0xa8e   : > { %p3306_p2 = por %p3305_p1, %p3304_p0 }
 0xa8f   : > { %p3302_p13 = pneg %p3301_p12 }
 0xa90   : > { %p3308_p5 = por %p3307_p4, %p3306_p2 }
 0xa92   : > { %p3309_p6 = pnand %p3308_p5, %p3302_p13 }
 0xa94   : > { %3312 = shalt.err (!%p3309_p6)
}
 0xa95   : > { %3160 = dma.vmem_to_hbm [thread:$0]  (%p3533_p3), %s2553_s26, 128, %s3916_s17, %s2539_s4  }
 0xa96 PF: > { %s4065_s21 = sld [smem:[#allocation13_spill]]  ;;  %s4066_s1 = sld [smem:[#allocation6_spill]] }
 0xa9c   : > { %p3166_p7 = scmp.ge.s32.totalorder %s4065_s21, 2  ;;  %s2564_s5 = sand.u32 1, %s4066_s1  }
 0xa9d   : > { %s2565_s24 = scalar_lea.sflag [#allocation4], %s2564_s5 }
 0xa9e   : > { %p3163_p8 = pnand %p3166_p7, %p3543_p9 }
 0xaa0   : > { %3346 = dma.done.wait (!%p3163_p8), %s2565_s24, 128  }
 0xaa1   : > { %3348 = vsyncadd (!%p3163_p8), %s2565_s24, 4294967168  ;;  %s32_s23 = sadd.s32 1, %s4065_s21   ;;  %s4068_s0 = sld [smem:[#allocation7_spill]] }
 0xaa2   : > { %p29_p10 = scmp.ge.s32.totalorder %s32_s23, 6   ;;  %s4069_s30 = sld [smem:[#allocation8_spill]] }
 0xaa3   : > { %s4070_s20 = sld [smem:[#allocation18_spill]]  ;;  %s4071_s21 = sld [smem:[#allocation11_spill]] }
 0xaa4   : > { %s4072_s1 = sld [smem:[#allocation12_spill]]  ;;  %s4073_s22 = sld [smem:[#allocation14_spill]] }
 0xaa5   : > { %s4074_s2 = sld [smem:[#allocation16_spill]]  ;;  %31 = sbr.rel (!%p29_p10) target bundleno = 19 (0x13), region = 187 }
 0xaac   :  { %2570 = vsyncpa [#allocation4], 1 }
 0xaad   :  { %2572 = vsyncpa [#allocation4 + $0x1], 1 }

</bundles_post_ra>
